<compile_context>
chip_gen: v7x
topology: tpu7x:2x2x1
jax: 0.10.0
libtpu: 0.0.40
codegen_flags: <defaults>
</compile_context>

<pallas_src>
import functools

import jax
import jax.numpy as jnp
from jax import lax
from jax.experimental import pallas as pl
from jax.experimental.pallas import tpu as pltpu

NEG_SLOPE = 0.01  # nn.LeakyReLU default negative slope


def _leaky(x):
    return jnp.where(x > 0, x, NEG_SLOPE * x)


def _conv3x3(x, w_ref, b_ref, mask_rows, shifts, col_ref):
    """3x3 'SAME' conv of a lane-dense (Cin, H*W) plane -> (Cout, H*W) f32.

    The 9 taps are static lane rotations (pltpu.roll) of the input,
    boundary-masked and stacked into the (9*Cin, H*W) `col_ref` scratch
    (every row is overwritten, so no zero-fill is needed), then contracted
    against the pre-flattened (Cout, 9*Cin) weight in a single MXU matmul.
    Bias is fused here; LeakyReLU / residual adds are fused by the caller.
    """
    cin = x.shape[0]
    for t, shift in enumerate(shifts):
        if shift == 0:                               # centre tap: no roll/mask
            col_ref[t * cin:(t + 1) * cin, :] = x
        else:
            col_ref[t * cin:(t + 1) * cin, :] = (
                pltpu.roll(x, shift, 1) * mask_rows[t])
    out = jnp.dot(w_ref[...], col_ref[...],
                  preferred_element_type=jnp.float32)
    return out + b_ref[...]                          # (Cout, 1) lane broadcast


def rev_part_kernel(x_ref,
                    f1_w1, f1_b1, f1_w2, f1_b2,
                    g1_w1, g1_b1, g1_w2, g1_b2,
                    mask_ref, o_ref, col_ref, *, shifts):
    x = x_ref[...].astype(jnp.float32)               # (2C, H*W), lane-dense
    C = x.shape[0] // 2
    x1 = x[:C]
    x2 = x[C:]

    # (1, H*W) boundary-mask rows, loaded once and reused by all 4 convs.
    mask_rows = [None if s == 0 else mask_ref[t:t + 1, :]
                 for t, s in enumerate(shifts)]

    conv = functools.partial(_conv3x3, mask_rows=mask_rows, shifts=shifts,
                             col_ref=col_ref)

    # y1 = x1 + f1(x2)   (bias + LeakyReLU + residual fused elementwise)
    h = _leaky(conv(x2, f1_w1, f1_b1))
    y1 = x1 + conv(h, f1_w2, f1_b2)

    # y2 = x2 + g1(y1)
    h = _leaky(conv(y1, g1_w1, g1_b1))
    y2 = x2 + conv(h, g1_w2, g1_b2)

    # Single sublane-aligned, full-lane-width (2C, H*W) store.
    o_ref[...] = jnp.concatenate([y1, y2], axis=0).astype(o_ref.dtype)


def rev_part_forward(x_nchw, params):
    """Wrapper: NCHW input (PyTorch convention) -> NCHW output."""
    N, C2, H, W = x_nchw.shape
    C = C2 // 2
    HW = H * W
    # Pure reshape: channels stay on sublanes, H*W becomes the lane axis.
    x_flat = x_nchw.reshape(N, C2, HW)

    def w_to_mat(w):                 # PyTorch OIHW -> (Cout, 9*Cin), tap-major
        return jnp.transpose(w, (0, 2, 3, 1)).reshape(w.shape[0], -1)

    weights = []
    for pref in ("f1", "g1"):
        for layer in ("1", "2"):
            weights.append(w_to_mat(params[f"{pref}_w{layer}"]))
            weights.append(params[f"{pref}_b{layer}"].reshape(-1, 1))

    # Precompute per-tap boundary masks and static lane-roll amounts.
    ii = jnp.arange(HW, dtype=jnp.int32)
    hh, ww = ii // W, ii % W
    masks, shifts = [], []
    for ky in range(3):
        for kx in range(3):
            dy, dx = ky - 1, kx - 1
            valid = ((hh + dy >= 0) & (hh + dy < H) &
                     (ww + dx >= 0) & (ww + dx < W))
            masks.append(valid.astype(jnp.float32))
            shifts.append((-(dy * W + dx)) % HW)     # roll so out[i] = x[i + d]
    mask_arr = jnp.stack(masks, axis=0)              # (9, HW)

    def full_spec(a):                                # all params/masks are 2D
        return pl.BlockSpec(a.shape, lambda b: (0, 0))

    in_specs = ([pl.BlockSpec((None, C2, HW), lambda b: (b, 0, 0))]
                + [full_spec(w) for w in weights]
                + [full_spec(mask_arr)])

    kernel = functools.partial(rev_part_kernel, shifts=tuple(shifts))

    out_flat = pl.pallas_call(
        kernel,
        out_shape=jax.ShapeDtypeStruct((N, C2, HW), x_flat.dtype),
        grid_spec=pltpu.PrefetchScalarGridSpec(
            num_scalar_prefetch=0,
            grid=(N,),
            in_specs=in_specs,
            out_specs=pl.BlockSpec((None, C2, HW), lambda b: (b, 0, 0)),
            scratch_shapes=[pltpu.VMEM((9 * C, HW), jnp.float32)],  # im2col
        ),
        compiler_params=pltpu.CompilerParams(
            dimension_semantics=("parallel",)),      # batch -> 2 TCs on v7x
    )(x_flat, *weights, mask_arr)

    return out_flat.reshape(N, C2, H, W)


# -------------------------- pure-JAX reference ------------------------------
def rev_part_ref(x, params):
    def conv(h, w, b):
        out = lax.conv_general_dilated(
            h, w, window_strides=(1, 1), padding="SAME",
            dimension_numbers=("NCHW", "OIHW", "NCHW"))
        return out + b.reshape(1, -1, 1, 1)

    def block(h, w1, b1, w2, b2):
        h = conv(h, w1, b1)
        h = jnp.where(h > 0, h, NEG_SLOPE * h)
        return conv(h, w2, b2)

    C = x.shape[1] // 2
    x1, x2 = x[:, :C], x[:, C:]
    y1 = x1 + block(x2, params["f1_w1"], params["f1_b1"],
                    params["f1_w2"], params["f1_b2"])
    y2 = x2 + block(y1, params["g1_w1"], params["g1_b1"],
                    params["g1_w2"], params["g1_b2"])
    return jnp.concatenate([y1, y2], axis=1)


if __name__ == "__main__":
    in_ch = 4                 # channels per half (Conv2d(in_ch, in_ch, 3))
    N, H, W = 2, 16, 16

    key = jax.random.PRNGKey(0)
    keys = jax.random.split(key, 9)
    x = jax.random.normal(keys[0], (N, 2 * in_ch, H, W), jnp.float32)

    # Deterministic synthetic parameters (PyTorch Conv2d-style uniform bound).
    bound = 1.0 / (in_ch * 3 * 3) ** 0.5
    params = {}
    ki = 1
    for pref in ("f1", "g1"):
        for layer in ("1", "2"):
            params[f"{pref}_w{layer}"] = jax.random.uniform(
                keys[ki], (in_ch, in_ch, 3, 3), jnp.float32, -bound, bound)
            params[f"{pref}_b{layer}"] = jax.random.uniform(
                keys[ki + 1], (in_ch,), jnp.float32, -bound, bound)
            ki += 2

    y = rev_part_forward(x, params)
    y = jax.block_until_ready(y)

    y_ref = rev_part_ref(x, params)
    assert y.shape == (N, 2 * in_ch, H, W)
    max_err = float(jnp.max(jnp.abs(y - y_ref)))
    assert jnp.allclose(y, y_ref, atol=1e-4, rtol=1e-4), max_err

    print("KERNEL_OK")
</pallas_src>

<mosaic_0001>
module attributes {stable_mosaic.version = 11 : i64} {
  func.func @rev_part_kernel(%arg0: i32, %arg1: memref<1x8x256xf32, #tpu.memory_space<vmem>>, %arg2: memref<4x36xf32, #tpu.memory_space<vmem>>, %arg3: memref<4x1xf32, #tpu.memory_space<vmem>>, %arg4: memref<4x36xf32, #tpu.memory_space<vmem>>, %arg5: memref<4x1xf32, #tpu.memory_space<vmem>>, %arg6: memref<4x36xf32, #tpu.memory_space<vmem>>, %arg7: memref<4x1xf32, #tpu.memory_space<vmem>>, %arg8: memref<4x36xf32, #tpu.memory_space<vmem>>, %arg9: memref<4x1xf32, #tpu.memory_space<vmem>>, %arg10: memref<9x256xf32, #tpu.memory_space<vmem>>, %arg11: memref<1x8x256xf32, #tpu.memory_space<vmem>>, %arg12: memref<36x256xf32, #tpu.memory_space<vmem>>) attributes {dimension_semantics = [#tpu.dimension_semantics<parallel>], iteration_bounds = array<i64: 2>, scalar_prefetch = 0 : i64, scratch_operands = 1 : i64, tpu.core_type = #tpu.core_type<tc>, window_params = [{transform_indices = @transform_0, window_bounds = array<i64: 1, 8, 256>}, {pipeline_mode = #tpu.pipeline_mode<synchronous>, transform_indices = @transform_1, window_bounds = array<i64: 4, 36>}, {pipeline_mode = #tpu.pipeline_mode<synchronous>, transform_indices = @transform_2, window_bounds = array<i64: 4, 1>}, {pipeline_mode = #tpu.pipeline_mode<synchronous>, transform_indices = @transform_3, window_bounds = array<i64: 4, 36>}, {pipeline_mode = #tpu.pipeline_mode<synchronous>, transform_indices = @transform_4, window_bounds = array<i64: 4, 1>}, {pipeline_mode = #tpu.pipeline_mode<synchronous>, transform_indices = @transform_5, window_bounds = array<i64: 4, 36>}, {pipeline_mode = #tpu.pipeline_mode<synchronous>, transform_indices = @transform_6, window_bounds = array<i64: 4, 1>}, {pipeline_mode = #tpu.pipeline_mode<synchronous>, transform_indices = @transform_7, window_bounds = array<i64: 4, 36>}, {pipeline_mode = #tpu.pipeline_mode<synchronous>, transform_indices = @transform_8, window_bounds = array<i64: 4, 1>}, {pipeline_mode = #tpu.pipeline_mode<synchronous>, transform_indices = @transform_9, window_bounds = array<i64: 9, 256>}, {transform_indices = @transform_10, window_bounds = array<i64: 1, 8, 256>}]} {
    %c0 = arith.constant 0 : index
    %c0_0 = arith.constant 0 : index
    %c0_1 = arith.constant 0 : index
    %0 = vector.load %arg1[%c0, %c0_0, %c0_1] : memref<1x8x256xf32, #tpu.memory_space<vmem>>, vector<1x8x256xf32>
    %1 = vector.shape_cast %0 : vector<1x8x256xf32> to vector<8x256xf32>
    %2 = vector.extract_strided_slice %1 {offsets = [0, 0], sizes = [4, 256], strides = [1, 1]} : vector<8x256xf32> to vector<4x256xf32>
    %3 = vector.extract_strided_slice %1 {offsets = [4, 0], sizes = [4, 256], strides = [1, 1]} : vector<8x256xf32> to vector<4x256xf32>
    %c0_2 = arith.constant 0 : index
    %c0_3 = arith.constant 0 : index
    %4 = vector.load %arg10[%c0_2, %c0_3] : memref<9x256xf32, #tpu.memory_space<vmem>>, vector<1x256xf32>
    %c1 = arith.constant 1 : index
    %c0_4 = arith.constant 0 : index
    %5 = vector.load %arg10[%c1, %c0_4] : memref<9x256xf32, #tpu.memory_space<vmem>>, vector<1x256xf32>
    %c2 = arith.constant 2 : index
    %c0_5 = arith.constant 0 : index
    %6 = vector.load %arg10[%c2, %c0_5] : memref<9x256xf32, #tpu.memory_space<vmem>>, vector<1x256xf32>
    %c3 = arith.constant 3 : index
    %c0_6 = arith.constant 0 : index
    %7 = vector.load %arg10[%c3, %c0_6] : memref<9x256xf32, #tpu.memory_space<vmem>>, vector<1x256xf32>
    %c5 = arith.constant 5 : index
    %c0_7 = arith.constant 0 : index
    %8 = vector.load %arg10[%c5, %c0_7] : memref<9x256xf32, #tpu.memory_space<vmem>>, vector<1x256xf32>
    %c6 = arith.constant 6 : index
    %c0_8 = arith.constant 0 : index
    %9 = vector.load %arg10[%c6, %c0_8] : memref<9x256xf32, #tpu.memory_space<vmem>>, vector<1x256xf32>
    %c7 = arith.constant 7 : index
    %c0_9 = arith.constant 0 : index
    %10 = vector.load %arg10[%c7, %c0_9] : memref<9x256xf32, #tpu.memory_space<vmem>>, vector<1x256xf32>
    %c8 = arith.constant 8 : index
    %c0_10 = arith.constant 0 : index
    %11 = vector.load %arg10[%c8, %c0_10] : memref<9x256xf32, #tpu.memory_space<vmem>>, vector<1x256xf32>
    %c17_i32 = arith.constant 17 : i32
    %12 = tpu.dynamic_rotate %3 by %c17_i32 dim 1 : vector<4x256xf32>, i32 -> vector<4x256xf32>
    %13 = vector.broadcast %4 : vector<1x256xf32> to vector<4x256xf32>
    %14 = arith.mulf %12, %13 : vector<4x256xf32>
    %c0_11 = arith.constant 0 : index
    %c0_12 = arith.constant 0 : index
    %15 = vector.load %arg12[%c0_11, %c0_12] : memref<36x256xf32, #tpu.memory_space<vmem>>, vector<4x256xf32>
    tpu.vector_store %arg12[%c0_11, %c0_12], %14 {strides = array<i32>} : memref<36x256xf32, #tpu.memory_space<vmem>>, vector<4x256xf32>,
    %c16_i32 = arith.constant 16 : i32
    %16 = tpu.dynamic_rotate %3 by %c16_i32 dim 1 : vector<4x256xf32>, i32 -> vector<4x256xf32>
    %17 = vector.broadcast %5 : vector<1x256xf32> to vector<4x256xf32>
    %18 = arith.mulf %16, %17 : vector<4x256xf32>
    %c4 = arith.constant 4 : index
    %c0_13 = arith.constant 0 : index
    %19 = vector.load %arg12[%c4, %c0_13] : memref<36x256xf32, #tpu.memory_space<vmem>>, vector<4x256xf32>
    tpu.vector_store %arg12[%c4, %c0_13], %18 {strides = array<i32>} : memref<36x256xf32, #tpu.memory_space<vmem>>, vector<4x256xf32>,
    %c15_i32 = arith.constant 15 : i32
    %20 = tpu.dynamic_rotate %3 by %c15_i32 dim 1 : vector<4x256xf32>, i32 -> vector<4x256xf32>
    %21 = vector.broadcast %6 : vector<1x256xf32> to vector<4x256xf32>
    %22 = arith.mulf %20, %21 : vector<4x256xf32>
    %c8_14 = arith.constant 8 : index
    %c0_15 = arith.constant 0 : index
    %23 = vector.load %arg12[%c8_14, %c0_15] : memref<36x256xf32, #tpu.memory_space<vmem>>, vector<4x256xf32>
    tpu.vector_store %arg12[%c8_14, %c0_15], %22 {strides = array<i32>} : memref<36x256xf32, #tpu.memory_space<vmem>>, vector<4x256xf32>,
    %c1_i32 = arith.constant 1 : i32
    %24 = tpu.dynamic_rotate %3 by %c1_i32 dim 1 : vector<4x256xf32>, i32 -> vector<4x256xf32>
    %25 = vector.broadcast %7 : vector<1x256xf32> to vector<4x256xf32>
    %26 = arith.mulf %24, %25 : vector<4x256xf32>
    %c12 = arith.constant 12 : index
    %c0_16 = arith.constant 0 : index
    %27 = vector.load %arg12[%c12, %c0_16] : memref<36x256xf32, #tpu.memory_space<vmem>>, vector<4x256xf32>
    tpu.vector_store %arg12[%c12, %c0_16], %26 {strides = array<i32>} : memref<36x256xf32, #tpu.memory_space<vmem>>, vector<4x256xf32>,
    %c16 = arith.constant 16 : index
    %c0_17 = arith.constant 0 : index
    %28 = vector.load %arg12[%c16, %c0_17] : memref<36x256xf32, #tpu.memory_space<vmem>>, vector<4x256xf32>
    tpu.vector_store %arg12[%c16, %c0_17], %3 {strides = array<i32>} : memref<36x256xf32, #tpu.memory_space<vmem>>, vector<4x256xf32>,
    %c255_i32 = arith.constant 255 : i32
    %29 = tpu.dynamic_rotate %3 by %c255_i32 dim 1 : vector<4x256xf32>, i32 -> vector<4x256xf32>
    %30 = vector.broadcast %8 : vector<1x256xf32> to vector<4x256xf32>
    %31 = arith.mulf %29, %30 : vector<4x256xf32>
    %c20 = arith.constant 20 : index
    %c0_18 = arith.constant 0 : index
    %32 = vector.load %arg12[%c20, %c0_18] : memref<36x256xf32, #tpu.memory_space<vmem>>, vector<4x256xf32>
    tpu.vector_store %arg12[%c20, %c0_18], %31 {strides = array<i32>} : memref<36x256xf32, #tpu.memory_space<vmem>>, vector<4x256xf32>,
    %c241_i32 = arith.constant 241 : i32
    %33 = tpu.dynamic_rotate %3 by %c241_i32 dim 1 : vector<4x256xf32>, i32 -> vector<4x256xf32>
    %34 = vector.broadcast %9 : vector<1x256xf32> to vector<4x256xf32>
    %35 = arith.mulf %33, %34 : vector<4x256xf32>
    %c24 = arith.constant 24 : index
    %c0_19 = arith.constant 0 : index
    %36 = vector.load %arg12[%c24, %c0_19] : memref<36x256xf32, #tpu.memory_space<vmem>>, vector<4x256xf32>
    tpu.vector_store %arg12[%c24, %c0_19], %35 {strides = array<i32>} : memref<36x256xf32, #tpu.memory_space<vmem>>, vector<4x256xf32>,
    %c240_i32 = arith.constant 240 : i32
    %37 = tpu.dynamic_rotate %3 by %c240_i32 dim 1 : vector<4x256xf32>, i32 -> vector<4x256xf32>
    %38 = vector.broadcast %10 : vector<1x256xf32> to vector<4x256xf32>
    %39 = arith.mulf %37, %38 : vector<4x256xf32>
    %c28 = arith.constant 28 : index
    %c0_20 = arith.constant 0 : index
    %40 = vector.load %arg12[%c28, %c0_20] : memref<36x256xf32, #tpu.memory_space<vmem>>, vector<4x256xf32>
    tpu.vector_store %arg12[%c28, %c0_20], %39 {strides = array<i32>} : memref<36x256xf32, #tpu.memory_space<vmem>>, vector<4x256xf32>,
    %c239_i32 = arith.constant 239 : i32
    %41 = tpu.dynamic_rotate %3 by %c239_i32 dim 1 : vector<4x256xf32>, i32 -> vector<4x256xf32>
    %42 = vector.broadcast %11 : vector<1x256xf32> to vector<4x256xf32>
    %43 = arith.mulf %41, %42 : vector<4x256xf32>
    %c32 = arith.constant 32 : index
    %c0_21 = arith.constant 0 : index
    %44 = vector.load %arg12[%c32, %c0_21] : memref<36x256xf32, #tpu.memory_space<vmem>>, vector<4x256xf32>
    tpu.vector_store %arg12[%c32, %c0_21], %43 {strides = array<i32>} : memref<36x256xf32, #tpu.memory_space<vmem>>, vector<4x256xf32>,
    %c0_22 = arith.constant 0 : index
    %c0_23 = arith.constant 0 : index
    %45 = vector.load %arg2[%c0_22, %c0_23] : memref<4x36xf32, #tpu.memory_space<vmem>>, vector<4x36xf32>
    %c0_24 = arith.constant 0 : index
    %c0_25 = arith.constant 0 : index
    %46 = vector.load %arg12[%c0_24, %c0_25] : memref<36x256xf32, #tpu.memory_space<vmem>>, vector<36x256xf32>
    %cst = arith.constant dense<0.000000e+00> : vector<4x256xf32>
    %47 = tpu.matmul %45, %46, %cst {dimension_numbers = #tpu.dot_dimension_numbers<[1], [0], [0], [1], [0, 0, 1, 1], [], []>} : vector<4x36xf32>, vector<36x256xf32>, vector<4x256xf32> -> vector<4x256xf32>
    %c0_26 = arith.constant 0 : index
    %c0_27 = arith.constant 0 : index
    %48 = vector.load %arg3[%c0_26, %c0_27] : memref<4x1xf32, #tpu.memory_space<vmem>>, vector<4x1xf32>
    %49 = vector.broadcast %48 : vector<4x1xf32> to vector<4x256xf32>
    %50 = arith.addf %47, %49 : vector<4x256xf32>
    %cst_28 = arith.constant 0.000000e+00 : f32
    %51 = vector.broadcast %cst_28 : f32 to vector<4x256xf32>
    %52 = arith.cmpf ogt, %50, %51 : vector<4x256xf32>
    %cst_29 = arith.constant 0.00999999977 : f32
    %53 = vector.broadcast %cst_29 : f32 to vector<4x256xf32>
    %54 = arith.mulf %53, %50 : vector<4x256xf32>
    %55 = arith.select %52, %50, %54 : vector<4x256xi1>, vector<4x256xf32>
    %c17_i32_30 = arith.constant 17 : i32
    %56 = tpu.dynamic_rotate %55 by %c17_i32_30 dim 1 : vector<4x256xf32>, i32 -> vector<4x256xf32>
    %57 = vector.broadcast %4 : vector<1x256xf32> to vector<4x256xf32>
    %58 = arith.mulf %56, %57 : vector<4x256xf32>
    %c0_31 = arith.constant 0 : index
    %c0_32 = arith.constant 0 : index
    %59 = vector.load %arg12[%c0_31, %c0_32] : memref<36x256xf32, #tpu.memory_space<vmem>>, vector<4x256xf32>
    tpu.vector_store %arg12[%c0_31, %c0_32], %58 {strides = array<i32>} : memref<36x256xf32, #tpu.memory_space<vmem>>, vector<4x256xf32>,
    %c16_i32_33 = arith.constant 16 : i32
    %60 = tpu.dynamic_rotate %55 by %c16_i32_33 dim 1 : vector<4x256xf32>, i32 -> vector<4x256xf32>
    %61 = vector.broadcast %5 : vector<1x256xf32> to vector<4x256xf32>
    %62 = arith.mulf %60, %61 : vector<4x256xf32>
    %c4_34 = arith.constant 4 : index
    %c0_35 = arith.constant 0 : index
    %63 = vector.load %arg12[%c4_34, %c0_35] : memref<36x256xf32, #tpu.memory_space<vmem>>, vector<4x256xf32>
    tpu.vector_store %arg12[%c4_34, %c0_35], %62 {strides = array<i32>} : memref<36x256xf32, #tpu.memory_space<vmem>>, vector<4x256xf32>,
    %c15_i32_36 = arith.constant 15 : i32
    %64 = tpu.dynamic_rotate %55 by %c15_i32_36 dim 1 : vector<4x256xf32>, i32 -> vector<4x256xf32>
    %65 = vector.broadcast %6 : vector<1x256xf32> to vector<4x256xf32>
    %66 = arith.mulf %64, %65 : vector<4x256xf32>
    %c8_37 = arith.constant 8 : index
    %c0_38 = arith.constant 0 : index
    %67 = vector.load %arg12[%c8_37, %c0_38] : memref<36x256xf32, #tpu.memory_space<vmem>>, vector<4x256xf32>
    tpu.vector_store %arg12[%c8_37, %c0_38], %66 {strides = array<i32>} : memref<36x256xf32, #tpu.memory_space<vmem>>, vector<4x256xf32>,
    %c1_i32_39 = arith.constant 1 : i32
    %68 = tpu.dynamic_rotate %55 by %c1_i32_39 dim 1 : vector<4x256xf32>, i32 -> vector<4x256xf32>
    %69 = vector.broadcast %7 : vector<1x256xf32> to vector<4x256xf32>
    %70 = arith.mulf %68, %69 : vector<4x256xf32>
    %c12_40 = arith.constant 12 : index
    %c0_41 = arith.constant 0 : index
    %71 = vector.load %arg12[%c12_40, %c0_41] : memref<36x256xf32, #tpu.memory_space<vmem>>, vector<4x256xf32>
    tpu.vector_store %arg12[%c12_40, %c0_41], %70 {strides = array<i32>} : memref<36x256xf32, #tpu.memory_space<vmem>>, vector<4x256xf32>,
    %c16_42 = arith.constant 16 : index
    %c0_43 = arith.constant 0 : index
    %72 = vector.load %arg12[%c16_42, %c0_43] : memref<36x256xf32, #tpu.memory_space<vmem>>, vector<4x256xf32>
    tpu.vector_store %arg12[%c16_42, %c0_43], %55 {strides = array<i32>} : memref<36x256xf32, #tpu.memory_space<vmem>>, vector<4x256xf32>,
    %c255_i32_44 = arith.constant 255 : i32
    %73 = tpu.dynamic_rotate %55 by %c255_i32_44 dim 1 : vector<4x256xf32>, i32 -> vector<4x256xf32>
    %74 = vector.broadcast %8 : vector<1x256xf32> to vector<4x256xf32>
    %75 = arith.mulf %73, %74 : vector<4x256xf32>
    %c20_45 = arith.constant 20 : index
    %c0_46 = arith.constant 0 : index
    %76 = vector.load %arg12[%c20_45, %c0_46] : memref<36x256xf32, #tpu.memory_space<vmem>>, vector<4x256xf32>
    tpu.vector_store %arg12[%c20_45, %c0_46], %75 {strides = array<i32>} : memref<36x256xf32, #tpu.memory_space<vmem>>, vector<4x256xf32>,
    %c241_i32_47 = arith.constant 241 : i32
    %77 = tpu.dynamic_rotate %55 by %c241_i32_47 dim 1 : vector<4x256xf32>, i32 -> vector<4x256xf32>
    %78 = vector.broadcast %9 : vector<1x256xf32> to vector<4x256xf32>
    %79 = arith.mulf %77, %78 : vector<4x256xf32>
    %c24_48 = arith.constant 24 : index
    %c0_49 = arith.constant 0 : index
    %80 = vector.load %arg12[%c24_48, %c0_49] : memref<36x256xf32, #tpu.memory_space<vmem>>, vector<4x256xf32>
    tpu.vector_store %arg12[%c24_48, %c0_49], %79 {strides = array<i32>} : memref<36x256xf32, #tpu.memory_space<vmem>>, vector<4x256xf32>,
    %c240_i32_50 = arith.constant 240 : i32
    %81 = tpu.dynamic_rotate %55 by %c240_i32_50 dim 1 : vector<4x256xf32>, i32 -> vector<4x256xf32>
    %82 = vector.broadcast %10 : vector<1x256xf32> to vector<4x256xf32>
    %83 = arith.mulf %81, %82 : vector<4x256xf32>
    %c28_51 = arith.constant 28 : index
    %c0_52 = arith.constant 0 : index
    %84 = vector.load %arg12[%c28_51, %c0_52] : memref<36x256xf32, #tpu.memory_space<vmem>>, vector<4x256xf32>
    tpu.vector_store %arg12[%c28_51, %c0_52], %83 {strides = array<i32>} : memref<36x256xf32, #tpu.memory_space<vmem>>, vector<4x256xf32>,
    %c239_i32_53 = arith.constant 239 : i32
    %85 = tpu.dynamic_rotate %55 by %c239_i32_53 dim 1 : vector<4x256xf32>, i32 -> vector<4x256xf32>
    %86 = vector.broadcast %11 : vector<1x256xf32> to vector<4x256xf32>
    %87 = arith.mulf %85, %86 : vector<4x256xf32>
    %c32_54 = arith.constant 32 : index
    %c0_55 = arith.constant 0 : index
    %88 = vector.load %arg12[%c32_54, %c0_55] : memref<36x256xf32, #tpu.memory_space<vmem>>, vector<4x256xf32>
    tpu.vector_store %arg12[%c32_54, %c0_55], %87 {strides = array<i32>} : memref<36x256xf32, #tpu.memory_space<vmem>>, vector<4x256xf32>,
    %c0_56 = arith.constant 0 : index
    %c0_57 = arith.constant 0 : index
    %89 = vector.load %arg4[%c0_56, %c0_57] : memref<4x36xf32, #tpu.memory_space<vmem>>, vector<4x36xf32>
    %c0_58 = arith.constant 0 : index
    %c0_59 = arith.constant 0 : index
    %90 = vector.load %arg12[%c0_58, %c0_59] : memref<36x256xf32, #tpu.memory_space<vmem>>, vector<36x256xf32>
    %cst_60 = arith.constant dense<0.000000e+00> : vector<4x256xf32>
    %91 = tpu.matmul %89, %90, %cst_60 {dimension_numbers = #tpu.dot_dimension_numbers<[1], [0], [0], [1], [0, 0, 1, 1], [], []>} : vector<4x36xf32>, vector<36x256xf32>, vector<4x256xf32> -> vector<4x256xf32>
    %c0_61 = arith.constant 0 : index
    %c0_62 = arith.constant 0 : index
    %92 = vector.load %arg5[%c0_61, %c0_62] : memref<4x1xf32, #tpu.memory_space<vmem>>, vector<4x1xf32>
    %93 = vector.broadcast %92 : vector<4x1xf32> to vector<4x256xf32>
    %94 = arith.addf %91, %93 : vector<4x256xf32>
    %95 = arith.addf %2, %94 : vector<4x256xf32>
    %c17_i32_63 = arith.constant 17 : i32
    %96 = tpu.dynamic_rotate %95 by %c17_i32_63 dim 1 : vector<4x256xf32>, i32 -> vector<4x256xf32>
    %97 = vector.broadcast %4 : vector<1x256xf32> to vector<4x256xf32>
    %98 = arith.mulf %96, %97 : vector<4x256xf32>
    %c0_64 = arith.constant 0 : index
    %c0_65 = arith.constant 0 : index
    %99 = vector.load %arg12[%c0_64, %c0_65] : memref<36x256xf32, #tpu.memory_space<vmem>>, vector<4x256xf32>
    tpu.vector_store %arg12[%c0_64, %c0_65], %98 {strides = array<i32>} : memref<36x256xf32, #tpu.memory_space<vmem>>, vector<4x256xf32>,
    %c16_i32_66 = arith.constant 16 : i32
    %100 = tpu.dynamic_rotate %95 by %c16_i32_66 dim 1 : vector<4x256xf32>, i32 -> vector<4x256xf32>
    %101 = vector.broadcast %5 : vector<1x256xf32> to vector<4x256xf32>
    %102 = arith.mulf %100, %101 : vector<4x256xf32>
    %c4_67 = arith.constant 4 : index
    %c0_68 = arith.constant 0 : index
    %103 = vector.load %arg12[%c4_67, %c0_68] : memref<36x256xf32, #tpu.memory_space<vmem>>, vector<4x256xf32>
    tpu.vector_store %arg12[%c4_67, %c0_68], %102 {strides = array<i32>} : memref<36x256xf32, #tpu.memory_space<vmem>>, vector<4x256xf32>,
    %c15_i32_69 = arith.constant 15 : i32
    %104 = tpu.dynamic_rotate %95 by %c15_i32_69 dim 1 : vector<4x256xf32>, i32 -> vector<4x256xf32>
    %105 = vector.broadcast %6 : vector<1x256xf32> to vector<4x256xf32>
    %106 = arith.mulf %104, %105 : vector<4x256xf32>
    %c8_70 = arith.constant 8 : index
    %c0_71 = arith.constant 0 : index
    %107 = vector.load %arg12[%c8_70, %c0_71] : memref<36x256xf32, #tpu.memory_space<vmem>>, vector<4x256xf32>
    tpu.vector_store %arg12[%c8_70, %c0_71], %106 {strides = array<i32>} : memref<36x256xf32, #tpu.memory_space<vmem>>, vector<4x256xf32>,
    %c1_i32_72 = arith.constant 1 : i32
    %108 = tpu.dynamic_rotate %95 by %c1_i32_72 dim 1 : vector<4x256xf32>, i32 -> vector<4x256xf32>
    %109 = vector.broadcast %7 : vector<1x256xf32> to vector<4x256xf32>
    %110 = arith.mulf %108, %109 : vector<4x256xf32>
    %c12_73 = arith.constant 12 : index
    %c0_74 = arith.constant 0 : index
    %111 = vector.load %arg12[%c12_73, %c0_74] : memref<36x256xf32, #tpu.memory_space<vmem>>, vector<4x256xf32>
    tpu.vector_store %arg12[%c12_73, %c0_74], %110 {strides = array<i32>} : memref<36x256xf32, #tpu.memory_space<vmem>>, vector<4x256xf32>,
    %c16_75 = arith.constant 16 : index
    %c0_76 = arith.constant 0 : index
    %112 = vector.load %arg12[%c16_75, %c0_76] : memref<36x256xf32, #tpu.memory_space<vmem>>, vector<4x256xf32>
    tpu.vector_store %arg12[%c16_75, %c0_76], %95 {strides = array<i32>} : memref<36x256xf32, #tpu.memory_space<vmem>>, vector<4x256xf32>,
    %c255_i32_77 = arith.constant 255 : i32
    %113 = tpu.dynamic_rotate %95 by %c255_i32_77 dim 1 : vector<4x256xf32>, i32 -> vector<4x256xf32>
    %114 = vector.broadcast %8 : vector<1x256xf32> to vector<4x256xf32>
    %115 = arith.mulf %113, %114 : vector<4x256xf32>
    %c20_78 = arith.constant 20 : index
    %c0_79 = arith.constant 0 : index
    %116 = vector.load %arg12[%c20_78, %c0_79] : memref<36x256xf32, #tpu.memory_space<vmem>>, vector<4x256xf32>
    tpu.vector_store %arg12[%c20_78, %c0_79], %115 {strides = array<i32>} : memref<36x256xf32, #tpu.memory_space<vmem>>, vector<4x256xf32>,
    %c241_i32_80 = arith.constant 241 : i32
    %117 = tpu.dynamic_rotate %95 by %c241_i32_80 dim 1 : vector<4x256xf32>, i32 -> vector<4x256xf32>
    %118 = vector.broadcast %9 : vector<1x256xf32> to vector<4x256xf32>
    %119 = arith.mulf %117, %118 : vector<4x256xf32>
    %c24_81 = arith.constant 24 : index
    %c0_82 = arith.constant 0 : index
    %120 = vector.load %arg12[%c24_81, %c0_82] : memref<36x256xf32, #tpu.memory_space<vmem>>, vector<4x256xf32>
    tpu.vector_store %arg12[%c24_81, %c0_82], %119 {strides = array<i32>} : memref<36x256xf32, #tpu.memory_space<vmem>>, vector<4x256xf32>,
    %c240_i32_83 = arith.constant 240 : i32
    %121 = tpu.dynamic_rotate %95 by %c240_i32_83 dim 1 : vector<4x256xf32>, i32 -> vector<4x256xf32>
    %122 = vector.broadcast %10 : vector<1x256xf32> to vector<4x256xf32>
    %123 = arith.mulf %121, %122 : vector<4x256xf32>
    %c28_84 = arith.constant 28 : index
    %c0_85 = arith.constant 0 : index
    %124 = vector.load %arg12[%c28_84, %c0_85] : memref<36x256xf32, #tpu.memory_space<vmem>>, vector<4x256xf32>
    tpu.vector_store %arg12[%c28_84, %c0_85], %123 {strides = array<i32>} : memref<36x256xf32, #tpu.memory_space<vmem>>, vector<4x256xf32>,
    %c239_i32_86 = arith.constant 239 : i32
    %125 = tpu.dynamic_rotate %95 by %c239_i32_86 dim 1 : vector<4x256xf32>, i32 -> vector<4x256xf32>
    %126 = vector.broadcast %11 : vector<1x256xf32> to vector<4x256xf32>
    %127 = arith.mulf %125, %126 : vector<4x256xf32>
    %c32_87 = arith.constant 32 : index
    %c0_88 = arith.constant 0 : index
    %128 = vector.load %arg12[%c32_87, %c0_88] : memref<36x256xf32, #tpu.memory_space<vmem>>, vector<4x256xf32>
    tpu.vector_store %arg12[%c32_87, %c0_88], %127 {strides = array<i32>} : memref<36x256xf32, #tpu.memory_space<vmem>>, vector<4x256xf32>,
    %c0_89 = arith.constant 0 : index
    %c0_90 = arith.constant 0 : index
    %129 = vector.load %arg6[%c0_89, %c0_90] : memref<4x36xf32, #tpu.memory_space<vmem>>, vector<4x36xf32>
    %c0_91 = arith.constant 0 : index
    %c0_92 = arith.constant 0 : index
    %130 = vector.load %arg12[%c0_91, %c0_92] : memref<36x256xf32, #tpu.memory_space<vmem>>, vector<36x256xf32>
    %cst_93 = arith.constant dense<0.000000e+00> : vector<4x256xf32>
    %131 = tpu.matmul %129, %130, %cst_93 {dimension_numbers = #tpu.dot_dimension_numbers<[1], [0], [0], [1], [0, 0, 1, 1], [], []>} : vector<4x36xf32>, vector<36x256xf32>, vector<4x256xf32> -> vector<4x256xf32>
    %c0_94 = arith.constant 0 : index
    %c0_95 = arith.constant 0 : index
    %132 = vector.load %arg7[%c0_94, %c0_95] : memref<4x1xf32, #tpu.memory_space<vmem>>, vector<4x1xf32>
    %133 = vector.broadcast %132 : vector<4x1xf32> to vector<4x256xf32>
    %134 = arith.addf %131, %133 : vector<4x256xf32>
    %cst_96 = arith.constant 0.000000e+00 : f32
    %135 = vector.broadcast %cst_96 : f32 to vector<4x256xf32>
    %136 = arith.cmpf ogt, %134, %135 : vector<4x256xf32>
    %cst_97 = arith.constant 0.00999999977 : f32
    %137 = vector.broadcast %cst_97 : f32 to vector<4x256xf32>
    %138 = arith.mulf %137, %134 : vector<4x256xf32>
    %139 = arith.select %136, %134, %138 : vector<4x256xi1>, vector<4x256xf32>
    %c17_i32_98 = arith.constant 17 : i32
    %140 = tpu.dynamic_rotate %139 by %c17_i32_98 dim 1 : vector<4x256xf32>, i32 -> vector<4x256xf32>
    %141 = vector.broadcast %4 : vector<1x256xf32> to vector<4x256xf32>
    %142 = arith.mulf %140, %141 : vector<4x256xf32>
    %c0_99 = arith.constant 0 : index
    %c0_100 = arith.constant 0 : index
    %143 = vector.load %arg12[%c0_99, %c0_100] : memref<36x256xf32, #tpu.memory_space<vmem>>, vector<4x256xf32>
    tpu.vector_store %arg12[%c0_99, %c0_100], %142 {strides = array<i32>} : memref<36x256xf32, #tpu.memory_space<vmem>>, vector<4x256xf32>,
    %c16_i32_101 = arith.constant 16 : i32
    %144 = tpu.dynamic_rotate %139 by %c16_i32_101 dim 1 : vector<4x256xf32>, i32 -> vector<4x256xf32>
    %145 = vector.broadcast %5 : vector<1x256xf32> to vector<4x256xf32>
    %146 = arith.mulf %144, %145 : vector<4x256xf32>
    %c4_102 = arith.constant 4 : index
    %c0_103 = arith.constant 0 : index
    %147 = vector.load %arg12[%c4_102, %c0_103] : memref<36x256xf32, #tpu.memory_space<vmem>>, vector<4x256xf32>
    tpu.vector_store %arg12[%c4_102, %c0_103], %146 {strides = array<i32>} : memref<36x256xf32, #tpu.memory_space<vmem>>, vector<4x256xf32>,
    %c15_i32_104 = arith.constant 15 : i32
    %148 = tpu.dynamic_rotate %139 by %c15_i32_104 dim 1 : vector<4x256xf32>, i32 -> vector<4x256xf32>
    %149 = vector.broadcast %6 : vector<1x256xf32> to vector<4x256xf32>
    %150 = arith.mulf %148, %149 : vector<4x256xf32>
    %c8_105 = arith.constant 8 : index
    %c0_106 = arith.constant 0 : index
    %151 = vector.load %arg12[%c8_105, %c0_106] : memref<36x256xf32, #tpu.memory_space<vmem>>, vector<4x256xf32>
    tpu.vector_store %arg12[%c8_105, %c0_106], %150 {strides = array<i32>} : memref<36x256xf32, #tpu.memory_space<vmem>>, vector<4x256xf32>,
    %c1_i32_107 = arith.constant 1 : i32
    %152 = tpu.dynamic_rotate %139 by %c1_i32_107 dim 1 : vector<4x256xf32>, i32 -> vector<4x256xf32>
    %153 = vector.broadcast %7 : vector<1x256xf32> to vector<4x256xf32>
    %154 = arith.mulf %152, %153 : vector<4x256xf32>
    %c12_108 = arith.constant 12 : index
    %c0_109 = arith.constant 0 : index
    %155 = vector.load %arg12[%c12_108, %c0_109] : memref<36x256xf32, #tpu.memory_space<vmem>>, vector<4x256xf32>
    tpu.vector_store %arg12[%c12_108, %c0_109], %154 {strides = array<i32>} : memref<36x256xf32, #tpu.memory_space<vmem>>, vector<4x256xf32>,
    %c16_110 = arith.constant 16 : index
    %c0_111 = arith.constant 0 : index
    %156 = vector.load %arg12[%c16_110, %c0_111] : memref<36x256xf32, #tpu.memory_space<vmem>>, vector<4x256xf32>
    tpu.vector_store %arg12[%c16_110, %c0_111], %139 {strides = array<i32>} : memref<36x256xf32, #tpu.memory_space<vmem>>, vector<4x256xf32>,
    %c255_i32_112 = arith.constant 255 : i32
    %157 = tpu.dynamic_rotate %139 by %c255_i32_112 dim 1 : vector<4x256xf32>, i32 -> vector<4x256xf32>
    %158 = vector.broadcast %8 : vector<1x256xf32> to vector<4x256xf32>
    %159 = arith.mulf %157, %158 : vector<4x256xf32>
    %c20_113 = arith.constant 20 : index
    %c0_114 = arith.constant 0 : index
    %160 = vector.load %arg12[%c20_113, %c0_114] : memref<36x256xf32, #tpu.memory_space<vmem>>, vector<4x256xf32>
    tpu.vector_store %arg12[%c20_113, %c0_114], %159 {strides = array<i32>} : memref<36x256xf32, #tpu.memory_space<vmem>>, vector<4x256xf32>,
    %c241_i32_115 = arith.constant 241 : i32
    %161 = tpu.dynamic_rotate %139 by %c241_i32_115 dim 1 : vector<4x256xf32>, i32 -> vector<4x256xf32>
    %162 = vector.broadcast %9 : vector<1x256xf32> to vector<4x256xf32>
    %163 = arith.mulf %161, %162 : vector<4x256xf32>
    %c24_116 = arith.constant 24 : index
    %c0_117 = arith.constant 0 : index
    %164 = vector.load %arg12[%c24_116, %c0_117] : memref<36x256xf32, #tpu.memory_space<vmem>>, vector<4x256xf32>
    tpu.vector_store %arg12[%c24_116, %c0_117], %163 {strides = array<i32>} : memref<36x256xf32, #tpu.memory_space<vmem>>, vector<4x256xf32>,
    %c240_i32_118 = arith.constant 240 : i32
    %165 = tpu.dynamic_rotate %139 by %c240_i32_118 dim 1 : vector<4x256xf32>, i32 -> vector<4x256xf32>
    %166 = vector.broadcast %10 : vector<1x256xf32> to vector<4x256xf32>
    %167 = arith.mulf %165, %166 : vector<4x256xf32>
    %c28_119 = arith.constant 28 : index
    %c0_120 = arith.constant 0 : index
    %168 = vector.load %arg12[%c28_119, %c0_120] : memref<36x256xf32, #tpu.memory_space<vmem>>, vector<4x256xf32>
    tpu.vector_store %arg12[%c28_119, %c0_120], %167 {strides = array<i32>} : memref<36x256xf32, #tpu.memory_space<vmem>>, vector<4x256xf32>,
    %c239_i32_121 = arith.constant 239 : i32
    %169 = tpu.dynamic_rotate %139 by %c239_i32_121 dim 1 : vector<4x256xf32>, i32 -> vector<4x256xf32>
    %170 = vector.broadcast %11 : vector<1x256xf32> to vector<4x256xf32>
    %171 = arith.mulf %169, %170 : vector<4x256xf32>
    %c32_122 = arith.constant 32 : index
    %c0_123 = arith.constant 0 : index
    %172 = vector.load %arg12[%c32_122, %c0_123] : memref<36x256xf32, #tpu.memory_space<vmem>>, vector<4x256xf32>
    tpu.vector_store %arg12[%c32_122, %c0_123], %171 {strides = array<i32>} : memref<36x256xf32, #tpu.memory_space<vmem>>, vector<4x256xf32>,
    %c0_124 = arith.constant 0 : index
    %c0_125 = arith.constant 0 : index
    %173 = vector.load %arg8[%c0_124, %c0_125] : memref<4x36xf32, #tpu.memory_space<vmem>>, vector<4x36xf32>
    %c0_126 = arith.constant 0 : index
    %c0_127 = arith.constant 0 : index
    %174 = vector.load %arg12[%c0_126, %c0_127] : memref<36x256xf32, #tpu.memory_space<vmem>>, vector<36x256xf32>
    %cst_128 = arith.constant dense<0.000000e+00> : vector<4x256xf32>
    %175 = tpu.matmul %173, %174, %cst_128 {dimension_numbers = #tpu.dot_dimension_numbers<[1], [0], [0], [1], [0, 0, 1, 1], [], []>} : vector<4x36xf32>, vector<36x256xf32>, vector<4x256xf32> -> vector<4x256xf32>
    %c0_129 = arith.constant 0 : index
    %c0_130 = arith.constant 0 : index
    %176 = vector.load %arg9[%c0_129, %c0_130] : memref<4x1xf32, #tpu.memory_space<vmem>>, vector<4x1xf32>
    %177 = vector.broadcast %176 : vector<4x1xf32> to vector<4x256xf32>
    %178 = arith.addf %175, %177 : vector<4x256xf32>
    %179 = arith.addf %3, %178 : vector<4x256xf32>
    %180 = tpu.concatenate %95, %179 in 0 : vector<4x256xf32>, vector<4x256xf32> -> vector<8x256xf32>
    %c0_131 = arith.constant 0 : index
    %c0_132 = arith.constant 0 : index
    %c0_133 = arith.constant 0 : index
    %181 = vector.load %arg11[%c0_131, %c0_132, %c0_133] : memref<1x8x256xf32, #tpu.memory_space<vmem>>, vector<1x8x256xf32>
    %182 = vector.shape_cast %181 : vector<1x8x256xf32> to vector<8x256xf32>
    %183 = vector.shape_cast %180 : vector<8x256xf32> to vector<1x8x256xf32>
    tpu.vector_store %arg11[%c0_131, %c0_132, %c0_133], %183 {strides = array<i32>} : memref<1x8x256xf32, #tpu.memory_space<vmem>>, vector<1x8x256xf32>,
    return
  }
  func.func @transform_0(%arg0: i32) -> (i32, i32, i32) {
    %c0_i32 = arith.constant 0 : i32
    %c0_i32_0 = arith.constant 0 : i32
    %c0_i32_1 = arith.constant 0 : i32
    return %arg0, %c0_i32, %c0_i32_0 : i32, i32, i32
  }
  func.func @transform_1(%arg0: i32) -> (i32, i32) {
    %c0_i32 = arith.constant 0 : i32
    %c0_i32_0 = arith.constant 0 : i32
    %c0_i32_1 = arith.constant 0 : i32
    return %c0_i32, %c0_i32_0 : i32, i32
  }
  func.func @transform_2(%arg0: i32) -> (i32, i32) {
    %c0_i32 = arith.constant 0 : i32
    %c0_i32_0 = arith.constant 0 : i32
    %c0_i32_1 = arith.constant 0 : i32
    return %c0_i32, %c0_i32_0 : i32, i32
  }
  func.func @transform_3(%arg0: i32) -> (i32, i32) {
    %c0_i32 = arith.constant 0 : i32
    %c0_i32_0 = arith.constant 0 : i32
    %c0_i32_1 = arith.constant 0 : i32
    return %c0_i32, %c0_i32_0 : i32, i32
  }
  func.func @transform_4(%arg0: i32) -> (i32, i32) {
    %c0_i32 = arith.constant 0 : i32
    %c0_i32_0 = arith.constant 0 : i32
    %c0_i32_1 = arith.constant 0 : i32
    return %c0_i32, %c0_i32_0 : i32, i32
  }
  func.func @transform_5(%arg0: i32) -> (i32, i32) {
    %c0_i32 = arith.constant 0 : i32
    %c0_i32_0 = arith.constant 0 : i32
    %c0_i32_1 = arith.constant 0 : i32
    return %c0_i32, %c0_i32_0 : i32, i32
  }
  func.func @transform_6(%arg0: i32) -> (i32, i32) {
    %c0_i32 = arith.constant 0 : i32
    %c0_i32_0 = arith.constant 0 : i32
    %c0_i32_1 = arith.constant 0 : i32
    return %c0_i32, %c0_i32_0 : i32, i32
  }
  func.func @transform_7(%arg0: i32) -> (i32, i32) {
    %c0_i32 = arith.constant 0 : i32
    %c0_i32_0 = arith.constant 0 : i32
    %c0_i32_1 = arith.constant 0 : i32
    return %c0_i32, %c0_i32_0 : i32, i32
  }
  func.func @transform_8(%arg0: i32) -> (i32, i32) {
    %c0_i32 = arith.constant 0 : i32
    %c0_i32_0 = arith.constant 0 : i32
    %c0_i32_1 = arith.constant 0 : i32
    return %c0_i32, %c0_i32_0 : i32, i32
  }
  func.func @transform_9(%arg0: i32) -> (i32, i32) {
    %c0_i32 = arith.constant 0 : i32
    %c0_i32_0 = arith.constant 0 : i32
    %c0_i32_1 = arith.constant 0 : i32
    return %c0_i32, %c0_i32_0 : i32, i32
  }
  func.func @transform_10(%arg0: i32) -> (i32, i32, i32) {
    %c0_i32 = arith.constant 0 : i32
    %c0_i32_0 = arith.constant 0 : i32
    %c0_i32_1 = arith.constant 0 : i32
    return %arg0, %c0_i32, %c0_i32_0 : i32, i32, i32
  }
}

</mosaic_0001>

<bundles_post_ra>
// kernel: tpu_custom_call.1
= control target key start
LH: loop header
LB: loop body
LE: loop exit
PB: predicated region body
PF: predicated region fallthrough
CT: control target
= control target key end

     0   :  { %15 = vsyncpa [#allocation4], 0  ;;  %s2301_s0 = inlined_call_operand.hbm [shape: f32[2,8,256], index: 0, kind: input, shape index: {}]   ;;  %s2302_s1 = inlined_call_operand.vmem [shape: f32[4,36], index: 1, kind: input, shape index: {}]   ;;  %s2303_s2 = inlined_call_operand.vmem [shape: f32[4,1], index: 2, kind: input, shape index: {}]   ;;  %s2304_s3 = inlined_call_operand.vmem [shape: f32[4,36], index: 3, kind: input, shape index: {}]   ;;  %s2305_s4 = inlined_call_operand.vmem [shape: f32[4,1], index: 4, kind: input, shape index: {}]   ;;  %s2306_s5 = inlined_call_operand.vmem [shape: f32[4,36], index: 5, kind: input, shape index: {}]   ;;  %s2307_s6 = inlined_call_operand.vmem [shape: f32[4,1], index: 6, kind: input, shape index: {}]   ;;  %s2308_s7 = inlined_call_operand.vmem [shape: f32[4,36], index: 7, kind: input, shape index: {}]   ;;  %s2309_s8 = inlined_call_operand.vmem [shape: f32[4,1], index: 8, kind: input, shape index: {}]   ;;  %s2310_s9 = inlined_call_operand.vmem [shape: f32[9,256], index: 9, kind: input, shape index: {}]   ;;  %s2311_s10 = inlined_call_operand.hbm [shape: f32[2,8,256], index: 10, kind: output, shape index: {}]  }
   0x1   :  { %17 = vsyncpa [#allocation4 + $0x1], 0 }
   0x2   :  { %18 = vsyncpa [#allocation5], 0 }
   0x3   :  { %20 = vsyncpa [#allocation5 + $0x1], 0  ;;  %s1714_s13 = smov 0   ;;  %s1716_s14 = smov 0  }
   0x4   :  { %s1718_s15 = smov 0   ;;  %s1720_s16 = smov 0  }
   0x5 LB: > { %s1735_s17 = sadd.s32 4294967295, %s1645_s16   ;;  %s1422_s18 = sadd.s32 4294967294, %s1645_s16   ;;  %s1645_s16 = sphi %s1720_s16, %s2342_s16   ;;  %s1641_s15 = sphi %s1718_s15, %s2341_s15   ;;  %s1637_s14 = sphi %s1716_s14, %s2340_s14   ;;  %s1633_s13 = sphi %s1714_s13, %s2339_s13  }
   0x6   : > { %s1739_s19 = sadd.s32 1, %s1645_s16   ;;  %s33_s20 = sadd.s32 1, %s1641_s15 }
   0x7   : > { %s30_s21 = ssub.s32 %s1645_s16, %s1739_s19  ;;  %p40_p0 = scmp.ne.s32.totalorder %s1641_s15, %s1637_s14 }
   0x8   : > { %p31_p1 = scmp.eq.s32.totalorder %s30_s21, 0  ;;  %p41_p2 = scmp.eq.s32.totalorder %s1645_s16, 0 }
   0x9   : > { %p46_p3 = scmp.ne.s32.totalorder %s1637_s14, %s1633_s13  ;;  %p47_p4 = scmp.eq.s32.totalorder %s1735_s17, 0 }
   0xa   : > { %s1751_s22 = scalar_select %p31_p1, %s1641_s15, %s33_s20  }
   0xb   : > { %p1753_p5 = por %p41_p2, %p40_p0  ;;  %p1757_p6 = por %p47_p4, %p46_p3 }
   0xc   : > { %2322 = sst [smem:[#allocation9_spill]] %s1751_s22  ;;  %p259_p7 = scmp.eq.s32.totalorder %s1735_s17, 1 }
   0xd   : > { %p265_p8 = scmp.eq.s32.totalorder %s1422_s18, 1  ;;  %p1501_p10 = scmp.lt.s32.totalorder %s1645_s16, 2 }
   0xe   : > { %p1764_p11 = por %p259_p7, %p40_p0  ;;  %s312_s27 = sand.u32 1, %s1641_s15  }
   0xf   : > { %p1768_p12 = por %p265_p8, %p46_p3  ;;  %s1455_s28 = sshll.u32 %s1645_s16, 8 }
  0x10   : > { %s2325_s25 = scalar_select %p1764_p11, 1, 0 }
  0x11   : > { %s2326_s26 = scalar_select %p1768_p12, 1, 0 }
  0x12   : > { %s1425_s29 = sshll.u32 %s312_s27, 4  ;;  %s1777_s12 = scalar_lea.hbm %s2301_s0, %s1455_s28 }
  0x13   : > { %s316_s18 = scalar_lea.vmem [#allocation3], %s1425_s29  ;;  %p1781_p13 = pnand %p1501_p10, %p1753_p5 }
  0x14   : > { %s324_s20 = sshll.u32 %s316_s18, 4  ;;  %s313_s30 = scalar_lea.sflag [#allocation4], %s312_s27  ;;  %s1785_s20 = int_to_ptr.vmem [resolvable:$true] %s324_s20 }
  0x15   : > { %s1549_s28 = scalar_lea.hbm %s1777_s12, 256  ;;  %p1551_p3 = pneg %p1781_p13 }
  0x16   : > { %p1550_p2 = scmp.ne.s32.totalorder %s1777_s12, %s1549_s28  ;;  %s1554_s11 = scalar_lea.hbm %s2301_s0, 512 }
  0x17   : > { %p1555_p5 = scmp.lt.u32.totalorder %s1777_s12, %s2301_s0  ;;  %p1556_p8 = scmp.lt.u32.totalorder %s1554_s11, %s1549_s28 }
  0x18   : > { %p1552_p4 = pnand %p1551_p3, %p1550_p2  ;;  %p1558_p9 = scmp.lt.u32.totalorder %s1549_s28, %s1777_s12 }
  0x19   : > { %p1557_p10 = por %p1556_p8, %p1555_p5 }
  0x1a   : > { %p1553_p7 = pneg %p1552_p4 }
  0x1b   : > { %p1559_p0 = por %p1558_p9, %p1557_p10 }
  0x1d   : > { %p1560_p1 = pnand %p1559_p0, %p1553_p7 }
  0x1f   : > { %1563 = shalt.err (!%p1560_p1)
}
  0x20   : > { %s1564_s27 = scalar_lea.vmem %s1785_s20, 256  ;;  %s1647_s23 = smov [#allocation3]  }
  0x21   : > { %p1565_p2 = scmp.ne.s32.totalorder %s1785_s20, %s1564_s27  ;;  %s1569_s29 = sshll.u32 %s1647_s23, 4  ;;  %s1570_s29 = int_to_ptr.vmem [resolvable:$false] %s1569_s29 }
  0x22   : > { %s1571_s22 = scalar_lea.vmem %s1570_s29, 512  ;;  %p1572_p11 = scmp.lt.s32.totalorder %s1785_s20, %s1570_s29 }
  0x23   : > { %p1567_p4 = pnand %p1565_p2, %p1551_p3  ;;  %p1573_p5 = scmp.lt.s32.totalorder %s1571_s22, %s1564_s27 }
  0x25   : > { %p1568_p12 = pneg %p1567_p4  ;;  %p1574_p8 = por %p1573_p5, %p1572_p11 }
  0x27   : > { %p1575_p9 = pnand %p1574_p8, %p1568_p12 }
  0x29   : > { %1578 = shalt.err (!%p1575_p9)
}
  0x2a   : > { %1496 = dma.hbm_to_vmem [thread:$0]  (!%p1781_p13), %s1777_s12, 256, %s1785_s20, %s313_s30  }
  0x2b   : > { %p2328_p0 = scmp.lt.s32.totalorder %s1645_s16, 3  ;;  %p2329_p1 = scmp.ge.s32.totalorder %s1645_s16, 1 }
  0x2d   : > { %p330_p3 = pnand %p2329_p1, %p2328_p0 }
  0x2e   : > { %s1819_s28 = sand.u32 (!%p330_p3), 1, %s1637_s14  }
  0x2f   : > { %333 = sbr.rel (%p330_p3) target bundleno = 1580 (0x62c), region = 60  ;;  %s2313_s11 = sshll.u32 (!%p330_p3), %s1819_s28, 4 }
  0x30   : > { %s336_s18 = scalar_lea.sflag (!%p330_p3), [#allocation4], %s1819_s28  ;;  %s1825_s21 = scalar_lea.vmem (!%p330_p3), [#allocation3], %s2313_s11 }
  0x36   : > { %1624 = dma.done.wait (%p1757_p6), %s336_s18, 256  }
  0x37   : > { %1626 = vsyncadd (%p1757_p6), %s336_s18, 4294967040  ;;  %v1832_v0 = vld [vmem:[%s1825_s21] sm:$0xff]  ;;  %v1835_v1 = vld [vmem:[%s1825_s21 + $0x8] sm:$0xff]  ;;  %s1648_s12 = smov 1   ;;  %s1649_s20 = smov 16   ;;  %v1656_v4 = vmov 0.0   ;;  %v403_v7 = vlaneseq }
  0x38   : > { %v395_v2 = vrot.slane %v1832_v0, 4  ;;  %v396_v3 = vrot.slane %v1835_v1, 4  ;;  %s1650_s24 = smov 17   ;;  %s1651_s30 = smov 15   ;;  %695 = vmatprep.mubr.f32.mxu0 %v1656_v4  ;;  %904 = vmatprep.mubr.f32.mxu1 %v1656_v4  ;;  %v614_v5 = vld [vmem:[%s2303_s2] sm:$0xf] }
  0x39   : > { %s2320_s27 = smov 127   ;;  %s2318_s23 = smov 112   ;;  %v1657_v6 = vmov 0   ;;  %v410_v8 = vshrl.u32 %v403_v7, 7  ;;  %v1860_v9 = vand.u32 127, %v403_v7  ;;  %vm624_vm8 = vcmask 1043456  }
  0x3a   : > { %473 = vrot.lane.b32.xlu1 %v395_v2, %s1648_s12  ;;  %501 = vst [vmem:[#allocation2 + $0x20] sm:$0xf] %v395_v2  ;;  %423 = vrot.lane.b32.xlu0 %v395_v2, %s1649_s20  ;;  %502 = vst [vmem:[#allocation2 + $0x28] sm:$0xf] %v396_v3  ;;  %s2316_s29 = smov 113   ;;  %s2314_s22 = smov 111  }
  0x3b   : > { %1545 = vset.pattern.permute.xlu0 %v1657_v6  ;;  %1546 = vset.pattern.permute.xlu1 %v1657_v6  ;;  %v1862_v10 = vsub.s32 0, %v410_v8  ;;  %v1864_v11 = vsub.s32 1, %v410_v8  ;;  %v1433_v12 = vld [vmem:[%s2310_s9 + $0x3] ss:$8 sm:$0x3]  ;;  %vm477_vm0 = vcmp.lt.s32.totalorder %v1860_v9, 1 }
  0x3c   : > { %v1431_v13 = vld [vmem:[%s2310_s9 + $0x1] ss:$8 sm:$0x3]  ;;  %vm427_vm1 = vcmp.lt.s32.totalorder %v1860_v9, 16  ;;  %vm405_vm2 = vcmp.lt.s32.totalorder %v1860_v9, 17  ;;  %vm455_vm3 = vcmp.lt.s32.totalorder %v1860_v9, 15 }
  0x3d   : > { %v378_v16 = vld [vmem:[%s2310_s9] ss:$8 sm:$0x3]  ;;  %v1878_v17 = vrot.slane %v1433_v12, %v1862_v10  ;;  %v1881_v18 = vrot.slane %v1433_v12, %v1864_v11  ;;  %v1884_v19 = vrot.slane %v1431_v13, %v1862_v10  ;;  %v1887_v20 = vrot.slane %v1431_v13, %v1864_v11  ;;  %v1432_v33 = vld [vmem:[%s2310_s9 + $0x2] ss:$8 sm:$0x3] }
  0x3e   : > { %475 = vrot.lane.b32.xlu1 %v396_v3, %s1648_s12  ;;  %425 = vrot.lane.b32.xlu0 %v396_v3, %s1649_s20  ;;  %v1891_v23 = vrot.slane %v378_v16, %v1862_v10  ;;  %v1894_v24 = vrot.slane %v378_v16, %v1864_v11  ;;  %v1919_v44 = vrot.slane %v1432_v33, %v1862_v10  ;;  %v1434_v46 = vld [vmem:[%s2310_s9 + $0x5] ss:$8 sm:$0x3]  ;;  %vm507_vm4 = vcmp.lt.s32.totalorder %v1860_v9, 127  ;;  %p2335_p11 = scmp.ne.s32.totalorder %s2325_s25, 0 }
  0x3f   : > { %v1922_v45 = vrot.slane %v1432_v33, %v1864_v11  ;;  %v1935_v53 = vrot.slane %v1434_v46, %v1862_v10  ;;  %v1938_v54 = vrot.slane %v1434_v46, %v1864_v11  ;;  %v1436_v55 = vld [vmem:[%s2310_s9 + $0x7] ss:$8 sm:$0x3]  ;;  %vm557_vm5 = vcmp.lt.s32.totalorder %v1860_v9, 112 }
  0x40   : > { %v1951_v62 = vrot.slane %v1436_v55, %v1862_v10  ;;  %v1954_v63 = vrot.slane %v1436_v55, %v1864_v11  ;;  %vm535_vm6 = vcmp.lt.s32.totalorder %v1860_v9, 113  ;;  %vm585_vm7 = vcmp.lt.s32.totalorder %v1860_v9, 111  ;;  %v1228_v9 = vld [vmem:[%s2308_s7] sm:$0xf] }
  0x41   : > { %vm620_vm9 = vcmask 293888  }
  0x42   : > { %401 = vrot.lane.b32.xlu1 %v396_v3, %s1650_s24  ;;  %399 = vrot.lane.b32.xlu0 %v395_v2, %s1650_s24 }
  0x46   : > { %453 = vrot.lane.b32.xlu1 %v396_v3, %s1651_s30  ;;  %451 = vrot.lane.b32.xlu0 %v395_v2, %s1651_s30 }
  0x4a   : > { %505 = vrot.lane.b32.xlu1 %v396_v3, %s2320_s27  ;;  %503 = vrot.lane.b32.xlu0 %v395_v2, %s2320_s27  ;;  %s2330_s27 = smov 127  }
  0x4e   : > { %555 = vrot.lane.b32.xlu1 %v396_v3, %s2318_s23  ;;  %553 = vrot.lane.b32.xlu0 %v395_v2, %s2318_s23  ;;  %s2331_s23 = smov 112  }
  0x52   : > { %533 = vrot.lane.b32.xlu1 %v396_v3, %s2316_s29  ;;  %531 = vrot.lane.b32.xlu0 %v395_v2, %s2316_s29  ;;  %s2332_s29 = smov 113  }
  0x56   : > { %583 = vrot.lane.b32.xlu1 %v396_v3, %s2314_s22  ;;  %581 = vrot.lane.b32.xlu0 %v395_v2, %s2314_s22  ;;  %v1435_v2 = vld [vmem:[%s2310_s9 + $0x6] ss:$8 sm:$0x3]  ;;  %s2333_s22 = smov 111  }
  0x57   : > { %v1970_v16 = vrot.slane %v1435_v2, %v1864_v11 }
  0x5a   : > { %617 = vperm.xlu0 %1545, %v614_v5  }
  0xac   : > { %v474_v14 = vpop.permute.xlu1 %473  ;;  %v424_v15 = vpop.permute.xlu0 %423 }
  0xb0   : > { %v476_v21 = vpop.permute.xlu1 %475  ;;  %v426_v22 = vpop.permute.xlu0 %425 }
  0xb1   : > { %v478_v25 = vsel %vm477_vm0, %v474_v14, %v476_v21  ;;  %v479_v26 = vsel %vm477_vm0, %v476_v21, %v474_v14  ;;  %v428_v27 = vsel %vm427_vm1, %v424_v15, %v426_v22  ;;  %v429_v28 = vsel %vm427_vm1, %v426_v22, %v424_v15  ;;  %v1437_v22 = vld [vmem:[%s2310_s9 + $0x10] ss:$8 sm:$0x3] }
  0xb2   : > { %v491_v29 = vmul.f32 %v1878_v17, %v479_v26  ;;  %v492_v30 = vmul.f32 %v1881_v18, %v478_v25  ;;  %v441_v31 = vmul.f32 %v1884_v19, %v429_v28  ;;  %v442_v32 = vmul.f32 %v1887_v20, %v428_v27 }
  0xb3   : > { %v1967_v15 = vrot.slane %v1435_v2, %v1862_v10 }
  0xb4   : > { %v495_v34 = vrot.slane %v491_v29, 4  ;;  %v496_v35 = vrot.slane %v492_v30, 4  ;;  %v445_v36 = vrot.slane %v441_v31, 4  ;;  %v446_v37 = vrot.slane %v442_v32, 4  ;;  %v402_v38 = vpop.permute.xlu1 %401  ;;  %v400_v39 = vpop.permute.xlu0 %399 }
  0xb5   : > { %v406_v40 = vsel %vm405_vm2, %v400_v39, %v402_v38  ;;  %v407_v41 = vsel %vm405_vm2, %v402_v38, %v400_v39  ;;  %v1983_v38 = vrot.slane %v1437_v22, %v1862_v10  ;;  %v1986_v39 = vrot.slane %v1437_v22, %v1864_v11 }
  0xb6   : > { %499 = vst [vmem:[#allocation2 + $0x10] sm:$0xf0] %v495_v34  ;;  %500 = vst [vmem:[#allocation2 + $0x18] sm:$0xf0] %v496_v35  ;;  %v419_v42 = vmul.f32 %v1891_v23, %v407_v41  ;;  %v420_v43 = vmul.f32 %v1894_v24, %v406_v40 }
  0xb7   : > { %449 = vst [vmem:[#allocation2] sm:$0xf0] %v445_v36  ;;  %450 = vst [vmem:[#allocation2 + $0x8] sm:$0xf0] %v446_v37 }
  0xb8   : > { %421 = vst [vmem:[#allocation2] sm:$0xf] %v419_v42  ;;  %422 = vst [vmem:[#allocation2 + $0x8] sm:$0xf] %v420_v43  ;;  %v454_v47 = vpop.permute.xlu1 %453  ;;  %v452_v48 = vpop.permute.xlu0 %451 }
  0xb9   : > { %v456_v49 = vsel %vm455_vm3, %v452_v48, %v454_v47  ;;  %v457_v50 = vsel %vm455_vm3, %v454_v47, %v452_v48 }
  0xba   : > { %v469_v51 = vmul.f32 %v1919_v44, %v457_v50  ;;  %v470_v52 = vmul.f32 %v1922_v45, %v456_v49 }
  0xbc   : > { %471 = vst [vmem:[#allocation2 + $0x10] sm:$0xf] %v469_v51  ;;  %472 = vst [vmem:[#allocation2 + $0x18] sm:$0xf] %v470_v52  ;;  %v506_v56 = vpop.permute.xlu1 %505  ;;  %v504_v57 = vpop.permute.xlu0 %503 }
  0xbd   : > { %v508_v58 = vsel %vm507_vm4, %v504_v57, %v506_v56  ;;  %v509_v59 = vsel %vm507_vm4, %v506_v56, %v504_v57  ;;  %v603_v56 = vld [vmem:[%s2302_s1] sm:$0xf] }
  0xbe   : > { %v521_v60 = vmul.f32 %v1935_v53, %v508_v58  ;;  %v522_v61 = vmul.f32 %v1938_v54, %v509_v59 }
  0xbf   : > { %v605_v21 = vld [vmem:[#allocation2 + $0x8] sm:$0xff]  ;;  %v604_v26 = vld [vmem:[#allocation2] sm:$0xff] }
  0xc0   : > { %v525_v3 = vrot.slane %v521_v60, 4  ;;  %v526_v5 = vrot.slane %v522_v61, 4  ;;  %v556_v6 = vpop.permute.xlu1 %555  ;;  %v554_v7 = vpop.permute.xlu0 %553 }
  0xc1   : > { %v558_v8 = vsel %vm557_vm5, %v554_v7, %v556_v6  ;;  %v559_v12 = vsel %vm557_vm5, %v556_v6, %v554_v7  ;;  %v825_v7 = vld [vmem:[%s2305_s4] sm:$0xf] }
  0xc2   : > { %529 = vst [vmem:[#allocation2 + $0x20] sm:$0xf0] %v525_v3  ;;  %530 = vst [vmem:[#allocation2 + $0x28] sm:$0xf0] %v526_v5  ;;  %v571_v13 = vmul.f32 %v1951_v62, %v558_v8  ;;  %v572_v14 = vmul.f32 %v1954_v63, %v559_v12 }
  0xc3   : > { %v607_v25 = vld [vmem:[#allocation2 + $0x18] sm:$0xff]  ;;  %v606_v27 = vld [vmem:[#allocation2 + $0x10] sm:$0xff] }
  0xc4   : > { %v575_v28 = vrot.slane %v571_v13, 4  ;;  %v576_v29 = vrot.slane %v572_v14, 4  ;;  %v534_v30 = vpop.permute.xlu1 %533  ;;  %v532_v31 = vpop.permute.xlu0 %531  ;;  %v1457_v32 = vpack.c.bf16 %v607_v25, %v605_v21  ;;  %v1459_v33 = vpack.c.bf16 %v606_v27, %v604_v26 }
  0xc5   : > { %v536_v34 = vsel %vm535_vm6, %v532_v31, %v534_v30  ;;  %v537_v35 = vsel %vm535_vm6, %v534_v30, %v532_v31 }
  0xc6   : > { %579 = vst [vmem:[#allocation2 + $0x30] sm:$0xf0] %v575_v28  ;;  %580 = vst [vmem:[#allocation2 + $0x38] sm:$0xf0] %v576_v29  ;;  %v549_v36 = vmul.f32 %v1967_v15, %v536_v34  ;;  %v550_v37 = vmul.f32 %v1970_v16, %v537_v35  ;;  %1458 = vmatprep.subr.bf16.mxu0 %v1457_v32 }
  0xc7   : > { %1460 = vmatpush1.bf16.msra.mxu0 %v1459_v33 }
  0xc8   : > { %551 = vst [vmem:[#allocation2 + $0x30] sm:$0xf] %v549_v36  ;;  %552 = vst [vmem:[#allocation2 + $0x38] sm:$0xf] %v550_v37  ;;  %v584_v40 = vpop.permute.xlu1 %583  ;;  %v582_v41 = vpop.permute.xlu0 %581 }
  0xc9   : > { %v586_v42 = vsel %vm585_vm7, %v582_v41, %v584_v40  ;;  %v587_v43 = vsel %vm585_vm7, %v584_v40, %v582_v41  ;;  %v609_v10 = vld [vmem:[#allocation2 + $0x28] sm:$0xff]  ;;  %v608_v48 = vld [vmem:[#allocation2 + $0x20] sm:$0xff] }
  0xca   : > { %v599_v46 = vmul.f32 %v1983_v38, %v586_v42  ;;  %v600_v47 = vmul.f32 %v1986_v39, %v587_v43 }
  0xcc   : > { %601 = vst [vmem:[#allocation2 + $0x40] sm:$0xf] %v599_v46  ;;  %602 = vst [vmem:[#allocation2 + $0x48] sm:$0xf] %v600_v47 }
  0xcf   : > { %v611_v11 = vld [vmem:[#allocation2 + $0x38] sm:$0xff]  ;;  %v610_v49 = vld [vmem:[#allocation2 + $0x30] sm:$0xff] }
  0xd0   : > { %v1461_v50 = vpack.c.bf16 %v611_v11, %v609_v10  ;;  %v1463_v51 = vpack.c.bf16 %v610_v49, %v608_v48 }
  0xd2   : > { %1462 = vmatprep.subr.bf16.mxu0 %v1461_v50 }
  0xd3   : > { %1464 = vmatpush1.bf16.msra.mxu0 %v1463_v51  ;;  %v613_v52 = vld [vmem:[#allocation2 + $0x48] sm:$0xf]  ;;  %v612_v55 = vld [vmem:[#allocation2 + $0x40] sm:$0xf] }
  0xd4   : > { %1438 = vmatprep.subr.msk.mxu0 %vm624_vm8, %v613_v52 }
  0xd7   : > { %1439 = vmatpush1.msk.msra.mxu0 %vm624_vm8, %v612_v55 }
  0xd8   : > { %1440 = vmatmul.mubr.msk.f32.vlgmr.msra.gmra.mrb[0].mxu0 %vm620_vm9, %v603_v56 }
  0xd9   : > { %1109 = vmatprep.mubr.f32.mxu0 %v1656_v4  ;;  %v618_v57 = vpop.permute.xlu0 %617 }
 0x1ab   : > { %v697_v58 = vpop.f32.mrb[0].mxu0 }
 0x1ac   : > { %v698_v59 = vadd.f32 %v697_v58, %v618_v57  ;;  %v699_v60 = vpop.f32.mrb[1].mxu0 }
 0x1ad   : > { %v700_v61 = vadd.f32 %v699_v60, %v618_v57 }
 0x1ae   : > { %vm702_vm10 = vcmp.gt.f32.partialorder %v698_v59, 0.0  ;;  %v704_v2 = vmul.f32 0.01, %v698_v59 }
 0x1af   : > { %vm703_vm11 = vcmp.gt.f32.partialorder %v700_v61, 0.0  ;;  %v705_v3 = vmul.f32 0.01, %v700_v61 }
 0x1b0   : > { %v706_v5 = vsel %vm702_vm10, %v698_v59, %v704_v2 }
 0x1b1   : > { %760 = vst [vmem:[#allocation2 + $0x20] sm:$0xf] %v706_v5  ;;  %v707_v6 = vsel %vm703_vm11, %v700_v61, %v705_v3  ;;  %744 = vrot.lane.b32.xlu0 %v706_v5, %s1648_s12  ;;  %718 = vrot.lane.b32.xlu1 %v706_v5, %s1649_s20 }
 0x1b2   : > { %761 = vst [vmem:[#allocation2 + $0x28] sm:$0xf] %v707_v6 }
 0x1b5   : > { %708 = vrot.lane.b32.xlu0 %v706_v5, %s1650_s24  ;;  %720 = vrot.lane.b32.xlu1 %v707_v6, %s1649_s20 }
 0x1b9   : > { %734 = vrot.lane.b32.xlu0 %v706_v5, %s1651_s30  ;;  %746 = vrot.lane.b32.xlu1 %v707_v6, %s1648_s12 }
 0x1bd   : > { %762 = vrot.lane.b32.xlu0 %v706_v5, %s2330_s27  ;;  %710 = vrot.lane.b32.xlu1 %v707_v6, %s1650_s24 }
 0x1c1   : > { %788 = vrot.lane.b32.xlu0 %v706_v5, %s2331_s23  ;;  %736 = vrot.lane.b32.xlu1 %v707_v6, %s1651_s30 }
 0x1c5   : > { %778 = vrot.lane.b32.xlu0 %v706_v5, %s2332_s29  ;;  %764 = vrot.lane.b32.xlu1 %v707_v6, %s2330_s27 }
 0x1c9   : > { %804 = vrot.lane.b32.xlu0 %v706_v5, %s2333_s22  ;;  %790 = vrot.lane.b32.xlu1 %v707_v6, %s2331_s23 }
 0x1cd   : > { %828 = vperm.xlu0 %1545, %v825_v7   ;;  %780 = vrot.lane.b32.xlu1 %v707_v6, %s2332_s29 }
 0x1d1   : > { %806 = vrot.lane.b32.xlu1 %v707_v6, %s2333_s22 }
 0x223   : > { %v745_v8 = vpop.permute.xlu0 %744  ;;  %v719_v12 = vpop.permute.xlu1 %718 }
 0x227   : > { %v709_v13 = vpop.permute.xlu0 %708  ;;  %v721_v14 = vpop.permute.xlu1 %720 }
 0x228   : > { %v722_v21 = vsel %vm427_vm1, %v719_v12, %v721_v14  ;;  %v723_v22 = vsel %vm427_vm1, %v721_v14, %v719_v12 }
 0x229   : > { %v724_v25 = vmul.f32 %v723_v22, %v1884_v19  ;;  %v725_v26 = vmul.f32 %v722_v21, %v1887_v20 }
 0x22b   : > { %v728_v27 = vrot.slane %v724_v25, 4  ;;  %v729_v28 = vrot.slane %v725_v26, 4  ;;  %v735_v29 = vpop.permute.xlu0 %734  ;;  %v747_v30 = vpop.permute.xlu1 %746 }
 0x22c   : > { %v748_v31 = vsel %vm477_vm0, %v745_v8, %v747_v30  ;;  %v749_v32 = vsel %vm477_vm0, %v747_v30, %v745_v8 }
 0x22d   : > { %732 = vst [vmem:[#allocation2] sm:$0xf0] %v728_v27  ;;  %733 = vst [vmem:[#allocation2 + $0x8] sm:$0xf0] %v729_v28  ;;  %v750_v33 = vmul.f32 %v749_v32, %v1878_v17  ;;  %v751_v34 = vmul.f32 %v748_v31, %v1881_v18 }
 0x22f   : > { %v754_v35 = vrot.slane %v750_v33, 4  ;;  %v755_v36 = vrot.slane %v751_v34, 4  ;;  %v711_v37 = vpop.permute.xlu1 %710  ;;  %v763_v42 = vpop.permute.xlu0 %762 }
 0x230   : > { %v712_v40 = vsel %vm405_vm2, %v709_v13, %v711_v37  ;;  %v713_v41 = vsel %vm405_vm2, %v711_v37, %v709_v13 }
 0x231   : > { %758 = vst [vmem:[#allocation2 + $0x10] sm:$0xf0] %v754_v35  ;;  %759 = vst [vmem:[#allocation2 + $0x18] sm:$0xf0] %v755_v36  ;;  %v714_v43 = vmul.f32 %v713_v41, %v1891_v23  ;;  %v715_v46 = vmul.f32 %v712_v40, %v1894_v24 }
 0x233   : > { %716 = vst [vmem:[#allocation2] sm:$0xf] %v714_v43  ;;  %717 = vst [vmem:[#allocation2 + $0x8] sm:$0xf] %v715_v46  ;;  %v737_v47 = vpop.permute.xlu1 %736  ;;  %v789_v50 = vpop.permute.xlu0 %788 }
 0x234   : > { %v738_v10 = vsel %vm455_vm3, %v735_v29, %v737_v47  ;;  %v739_v11 = vsel %vm455_vm3, %v737_v47, %v735_v29 }
 0x235   : > { %v740_v48 = vmul.f32 %v739_v11, %v1919_v44  ;;  %v741_v49 = vmul.f32 %v738_v10, %v1922_v45  ;;  %v814_v10 = vld [vmem:[%s2304_s3] sm:$0xf] }
 0x237   : > { %742 = vst [vmem:[#allocation2 + $0x10] sm:$0xf] %v740_v48  ;;  %743 = vst [vmem:[#allocation2 + $0x18] sm:$0xf] %v741_v49  ;;  %v765_v51 = vpop.permute.xlu1 %764  ;;  %v779_v3 = vpop.permute.xlu0 %778 }
 0x238   : > { %v766_v52 = vsel %vm507_vm4, %v763_v42, %v765_v51  ;;  %v767_v55 = vsel %vm507_vm4, %v765_v51, %v763_v42 }
 0x239   : > { %v768_v56 = vmul.f32 %v766_v52, %v1935_v53  ;;  %v769_v57 = vmul.f32 %v767_v55, %v1938_v54 }
 0x23a   : > { %v816_v7 = vld [vmem:[#allocation2 + $0x8] sm:$0xff]  ;;  %v815_v12 = vld [vmem:[#allocation2] sm:$0xff] }
 0x23b   : > { %v772_v58 = vrot.slane %v768_v56, 4  ;;  %v773_v59 = vrot.slane %v769_v57, 4  ;;  %v791_v60 = vpop.permute.xlu1 %790  ;;  %v805_v31 = vpop.permute.xlu0 %804 }
 0x23c   : > { %v792_v61 = vsel %vm557_vm5, %v789_v50, %v791_v60  ;;  %v793_v2 = vsel %vm557_vm5, %v791_v60, %v789_v50 }
 0x23d   : > { %776 = vst [vmem:[#allocation2 + $0x20] sm:$0xf0] %v772_v58  ;;  %777 = vst [vmem:[#allocation2 + $0x28] sm:$0xf0] %v773_v59  ;;  %v794_v5 = vmul.f32 %v792_v61, %v1951_v62  ;;  %v795_v6 = vmul.f32 %v793_v2, %v1954_v63 }
 0x23e   : > { %v818_v8 = vld [vmem:[#allocation2 + $0x18] sm:$0xff]  ;;  %v817_v13 = vld [vmem:[#allocation2 + $0x10] sm:$0xff] }
 0x23f   : > { %v798_v14 = vrot.slane %v794_v5, 4  ;;  %v799_v21 = vrot.slane %v795_v6, 4  ;;  %v781_v22 = vpop.permute.xlu1 %780  ;;  %v1465_v25 = vpack.c.bf16 %v818_v8, %v816_v7  ;;  %v1467_v26 = vpack.c.bf16 %v817_v13, %v815_v12 }
 0x240   : > { %v782_v27 = vsel %vm535_vm6, %v779_v3, %v781_v22  ;;  %v783_v28 = vsel %vm535_vm6, %v781_v22, %v779_v3 }
 0x241   : > { %802 = vst [vmem:[#allocation2 + $0x30] sm:$0xf0] %v798_v14  ;;  %803 = vst [vmem:[#allocation2 + $0x38] sm:$0xf0] %v799_v21  ;;  %v784_v29 = vmul.f32 %v782_v27, %v1967_v15  ;;  %v785_v30 = vmul.f32 %v783_v28, %v1970_v16  ;;  %1466 = vmatprep.subr.bf16.mxu1 %v1465_v25 }
 0x242   : > { %1468 = vmatpush1.bf16.msra.mxu1 %v1467_v26 }
 0x243   : > { %786 = vst [vmem:[#allocation2 + $0x30] sm:$0xf] %v784_v29  ;;  %787 = vst [vmem:[#allocation2 + $0x38] sm:$0xf] %v785_v30  ;;  %v807_v32 = vpop.permute.xlu1 %806 }
 0x244   : > { %v808_v33 = vsel %vm585_vm7, %v805_v31, %v807_v32  ;;  %v809_v34 = vsel %vm585_vm7, %v807_v32, %v805_v31  ;;  %v820_v37 = vld [vmem:[#allocation2 + $0x28] sm:$0xff]  ;;  %v819_v41 = vld [vmem:[#allocation2 + $0x20] sm:$0xff] }
 0x245   : > { %v810_v35 = vmul.f32 %v808_v33, %v1983_v38  ;;  %v811_v36 = vmul.f32 %v809_v34, %v1986_v39 }
 0x247   : > { %812 = vst [vmem:[#allocation2 + $0x40] sm:$0xf] %v810_v35  ;;  %813 = vst [vmem:[#allocation2 + $0x48] sm:$0xf] %v811_v36 }
 0x24a   : > { %v822_v40 = vld [vmem:[#allocation2 + $0x38] sm:$0xff]  ;;  %v821_v42 = vld [vmem:[#allocation2 + $0x30] sm:$0xff] }
 0x24b   : > { %v1469_v43 = vpack.c.bf16 %v822_v40, %v820_v37  ;;  %v1471_v46 = vpack.c.bf16 %v821_v42, %v819_v41 }
 0x24c   : > { %v829_v48 = vpop.permute.xlu0 %828 }
 0x24d   : > { %1470 = vmatprep.subr.bf16.mxu1 %v1469_v43 }
 0x24e   : > { %1472 = vmatpush1.bf16.msra.mxu1 %v1471_v46  ;;  %v824_v47 = vld [vmem:[#allocation2 + $0x48] sm:$0xf]  ;;  %v823_v11 = vld [vmem:[#allocation2 + $0x40] sm:$0xf] }
 0x24f   : > { %1441 = vmatprep.subr.msk.mxu1 %vm624_vm8, %v824_v47 }
 0x252   : > { %1442 = vmatpush1.msk.msra.mxu1 %vm624_vm8, %v823_v11 }
 0x253   : > { %1443 = vmatmul.mubr.msk.f32.vlgmr.msra.gmra.mrb[0].mxu1 %vm620_vm9, %v814_v10 }
 0x254   : > { %1318 = vmatprep.mubr.f32.mxu1 %v1656_v4 }
 0x326   : > { %v906_v49 = vpop.f32.mrb[0].mxu1 }
 0x327   : > { %v907_v50 = vadd.f32 %v906_v49, %v829_v48  ;;  %v908_v51 = vpop.f32.mrb[1].mxu1 }
 0x328   : > { %v909_v52 = vadd.f32 %v908_v51, %v829_v48 }
 0x329   : > { %v2076_v55 = vadd.f32 %v907_v50, %v1832_v0  ;;  %v1030_v0 = vld [vmem:[%s2307_s6] sm:$0xf] }
 0x32a   : > { %v2079_v56 = vadd.f32 %v909_v52, %v1835_v1 }
 0x32b   : > { %965 = vst [vmem:[#allocation2 + $0x20] sm:$0xf] %v2076_v55  ;;  %923 = vrot.lane.b32.xlu1 %v2076_v55, %s1649_s20 }
 0x32c   : > { %966 = vst [vmem:[#allocation2 + $0x28] sm:$0xf] %v2079_v56  ;;  %925 = vrot.lane.b32.xlu0 %v2079_v56, %s1649_s20 }
 0x32f   : > { %949 = vrot.lane.b32.xlu1 %v2076_v55, %s1648_s12 }
 0x330   : > { %951 = vrot.lane.b32.xlu0 %v2079_v56, %s1648_s12 }
 0x333   : > { %913 = vrot.lane.b32.xlu1 %v2076_v55, %s1650_s24 }
 0x334   : > { %915 = vrot.lane.b32.xlu0 %v2079_v56, %s1650_s24 }
 0x337   : > { %939 = vrot.lane.b32.xlu1 %v2076_v55, %s1651_s30 }
 0x338   : > { %941 = vrot.lane.b32.xlu0 %v2079_v56, %s1651_s30 }
 0x33b   : > { %967 = vrot.lane.b32.xlu1 %v2076_v55, %s2330_s27 }
 0x33c   : > { %969 = vrot.lane.b32.xlu0 %v2079_v56, %s2330_s27 }
 0x33f   : > { %993 = vrot.lane.b32.xlu1 %v2076_v55, %s2331_s23 }
 0x340   : > { %995 = vrot.lane.b32.xlu0 %v2079_v56, %s2331_s23 }
 0x343   : > { %983 = vrot.lane.b32.xlu1 %v2076_v55, %s2332_s29 }
 0x344   : > { %985 = vrot.lane.b32.xlu0 %v2079_v56, %s2332_s29 }
 0x347   : > { %1009 = vrot.lane.b32.xlu1 %v2076_v55, %s2333_s22 }
 0x348   : > { %1011 = vrot.lane.b32.xlu0 %v2079_v56, %s2333_s22 }
 0x34b   : > { %1033 = vperm.xlu1 %1546, %v1030_v0  }
 0x39d   : > { %v924_v1 = vpop.permute.xlu1 %923 }
 0x39e   : > { %v926_v4 = vpop.permute.xlu0 %925 }
 0x39f   : > { %v927_v57 = vsel %vm427_vm1, %v924_v1, %v926_v4  ;;  %v928_v58 = vsel %vm427_vm1, %v926_v4, %v924_v1 }
 0x3a0   : > { %v929_v59 = vmul.f32 %v928_v58, %v1884_v19  ;;  %v930_v60 = vmul.f32 %v927_v57, %v1887_v20 }
 0x3a1   : > { %v950_v61 = vpop.permute.xlu1 %949 }
 0x3a2   : > { %v933_v2 = vrot.slane %v929_v59, 4  ;;  %v934_v3 = vrot.slane %v930_v60, 4  ;;  %v952_v5 = vpop.permute.xlu0 %951 }
 0x3a3   : > { %v953_v6 = vsel %vm477_vm0, %v950_v61, %v952_v5  ;;  %v954_v7 = vsel %vm477_vm0, %v952_v5, %v950_v61 }
 0x3a4   : > { %937 = vst [vmem:[#allocation2] sm:$0xf0] %v933_v2  ;;  %938 = vst [vmem:[#allocation2 + $0x8] sm:$0xf0] %v934_v3  ;;  %v955_v8 = vmul.f32 %v954_v7, %v1878_v17  ;;  %v956_v12 = vmul.f32 %v953_v6, %v1881_v18 }
 0x3a5   : > { %v914_v13 = vpop.permute.xlu1 %913 }
 0x3a6   : > { %v959_v14 = vrot.slane %v955_v8, 4  ;;  %v960_v21 = vrot.slane %v956_v12, 4  ;;  %v916_v22 = vpop.permute.xlu0 %915 }
 0x3a7   : > { %v917_v25 = vsel %vm405_vm2, %v914_v13, %v916_v22  ;;  %v918_v26 = vsel %vm405_vm2, %v916_v22, %v914_v13 }
 0x3a8   : > { %963 = vst [vmem:[#allocation2 + $0x10] sm:$0xf0] %v959_v14  ;;  %964 = vst [vmem:[#allocation2 + $0x18] sm:$0xf0] %v960_v21  ;;  %v919_v27 = vmul.f32 %v918_v26, %v1891_v23  ;;  %v920_v28 = vmul.f32 %v917_v25, %v1894_v24 }
 0x3a9   : > { %v940_v29 = vpop.permute.xlu1 %939 }
 0x3aa   : > { %921 = vst [vmem:[#allocation2] sm:$0xf] %v919_v27  ;;  %922 = vst [vmem:[#allocation2 + $0x8] sm:$0xf] %v920_v28  ;;  %v942_v30 = vpop.permute.xlu0 %941 }
 0x3ab   : > { %v943_v31 = vsel %vm455_vm3, %v940_v29, %v942_v30  ;;  %v944_v32 = vsel %vm455_vm3, %v942_v30, %v940_v29 }
 0x3ac   : > { %v945_v33 = vmul.f32 %v944_v32, %v1919_v44  ;;  %v946_v34 = vmul.f32 %v943_v31, %v1922_v45  ;;  %v1019_v31 = vld [vmem:[%s2306_s5] sm:$0xf] }
 0x3ad   : > { %v968_v35 = vpop.permute.xlu1 %967 }
 0x3ae   : > { %947 = vst [vmem:[#allocation2 + $0x10] sm:$0xf] %v945_v33  ;;  %948 = vst [vmem:[#allocation2 + $0x18] sm:$0xf] %v946_v34  ;;  %v970_v36 = vpop.permute.xlu0 %969 }
 0x3af   : > { %v971_v37 = vsel %vm507_vm4, %v968_v35, %v970_v36  ;;  %v972_v40 = vsel %vm507_vm4, %v970_v36, %v968_v35 }
 0x3b0   : > { %v973_v41 = vmul.f32 %v971_v37, %v1935_v53  ;;  %v974_v42 = vmul.f32 %v972_v40, %v1938_v54 }
 0x3b1   : > { %v994_v43 = vpop.permute.xlu1 %993  ;;  %v1021_v51 = vld [vmem:[#allocation2 + $0x8] sm:$0xff]  ;;  %v1020_v1 = vld [vmem:[#allocation2] sm:$0xff] }
 0x3b2   : > { %v977_v46 = vrot.slane %v973_v41, 4  ;;  %v978_v47 = vrot.slane %v974_v42, 4  ;;  %v996_v10 = vpop.permute.xlu0 %995 }
 0x3b3   : > { %v997_v11 = vsel %vm557_vm5, %v994_v43, %v996_v10  ;;  %v998_v48 = vsel %vm557_vm5, %v996_v10, %v994_v43 }
 0x3b4   : > { %981 = vst [vmem:[#allocation2 + $0x20] sm:$0xf0] %v977_v46  ;;  %982 = vst [vmem:[#allocation2 + $0x28] sm:$0xf0] %v978_v47  ;;  %v999_v49 = vmul.f32 %v997_v11, %v1951_v62  ;;  %v1000_v50 = vmul.f32 %v998_v48, %v1954_v63  ;;  %v1239_v46 = vld [vmem:[%s2309_s8] sm:$0xf] }
 0x3b5   : > { %v984_v52 = vpop.permute.xlu1 %983  ;;  %v1023_v0 = vld [vmem:[#allocation2 + $0x18] sm:$0xff]  ;;  %v1022_v4 = vld [vmem:[#allocation2 + $0x10] sm:$0xff] }
 0x3b6   : > { %v1003_v57 = vrot.slane %v999_v49, 4  ;;  %v1004_v58 = vrot.slane %v1000_v50, 4  ;;  %v986_v59 = vpop.permute.xlu0 %985  ;;  %v1473_v60 = vpack.c.bf16 %v1023_v0, %v1021_v51  ;;  %v1475_v61 = vpack.c.bf16 %v1022_v4, %v1020_v1 }
 0x3b7   : > { %v987_v2 = vsel %vm535_vm6, %v984_v52, %v986_v59  ;;  %v988_v3 = vsel %vm535_vm6, %v986_v59, %v984_v52 }
 0x3b8   : > { %1007 = vst [vmem:[#allocation2 + $0x30] sm:$0xf0] %v1003_v57  ;;  %1008 = vst [vmem:[#allocation2 + $0x38] sm:$0xf0] %v1004_v58  ;;  %v989_v5 = vmul.f32 %v987_v2, %v1967_v15  ;;  %v990_v6 = vmul.f32 %v988_v3, %v1970_v16  ;;  %1474 = vmatprep.subr.bf16.mxu0 %v1473_v60 }
 0x3b9   : > { %1476 = vmatpush1.bf16.msra.mxu0 %v1475_v61  ;;  %v1010_v7 = vpop.permute.xlu1 %1009 }
 0x3ba   : > { %991 = vst [vmem:[#allocation2 + $0x30] sm:$0xf] %v989_v5  ;;  %992 = vst [vmem:[#allocation2 + $0x38] sm:$0xf] %v990_v6  ;;  %v1012_v8 = vpop.permute.xlu0 %1011 }
 0x3bb   : > { %v1013_v12 = vsel %vm585_vm7, %v1010_v7, %v1012_v8  ;;  %v1014_v13 = vsel %vm585_vm7, %v1012_v8, %v1010_v7  ;;  %v1025_v22 = vld [vmem:[#allocation2 + $0x28] sm:$0xff]  ;;  %v1024_v26 = vld [vmem:[#allocation2 + $0x20] sm:$0xff] }
 0x3bc   : > { %v1015_v14 = vmul.f32 %v1013_v12, %v1983_v38  ;;  %v1016_v21 = vmul.f32 %v1014_v13, %v1986_v39 }
 0x3be   : > { %1017 = vst [vmem:[#allocation2 + $0x40] sm:$0xf] %v1015_v14  ;;  %1018 = vst [vmem:[#allocation2 + $0x48] sm:$0xf] %v1016_v21 }
 0x3c1   : > { %v1027_v25 = vld [vmem:[#allocation2 + $0x38] sm:$0xff]  ;;  %v1026_v27 = vld [vmem:[#allocation2 + $0x30] sm:$0xff] }
 0x3c2   : > { %v1477_v28 = vpack.c.bf16 %v1027_v25, %v1025_v22  ;;  %v1479_v29 = vpack.c.bf16 %v1026_v27, %v1024_v26 }
 0x3c4   : > { %1478 = vmatprep.subr.bf16.mxu0 %v1477_v28 }
 0x3c5   : > { %1480 = vmatpush1.bf16.msra.mxu0 %v1479_v29  ;;  %v1029_v30 = vld [vmem:[#allocation2 + $0x48] sm:$0xf]  ;;  %v1028_v32 = vld [vmem:[#allocation2 + $0x40] sm:$0xf] }
 0x3c6   : > { %1444 = vmatprep.subr.msk.mxu0 %vm624_vm8, %v1029_v30 }
 0x3c9   : > { %1445 = vmatpush1.msk.msra.mxu0 %vm624_vm8, %v1028_v32 }
 0x3ca   : > { %1446 = vmatmul.mubr.msk.f32.vlgmr.msra.gmra.mrb[2].mxu0 %vm620_vm9, %v1019_v31  ;;  %v1034_v33 = vpop.permute.xlu1 %1033 }
 0x49d   : > { %v1111_v34 = vpop.f32.mrb[2].mxu0 }
 0x49e   : > { %v1112_v35 = vadd.f32 %v1111_v34, %v1034_v33  ;;  %v1113_v36 = vpop.f32.mrb[3].mxu0 }
 0x49f   : > { %v1114_v37 = vadd.f32 %v1113_v36, %v1034_v33 }
 0x4a0   : > { %vm1116_vm12 = vcmp.gt.f32.partialorder %v1112_v35, 0.0  ;;  %v1118_v40 = vmul.f32 0.01, %v1112_v35 }
 0x4a1   : > { %vm1117_vm13 = vcmp.gt.f32.partialorder %v1114_v37, 0.0  ;;  %v1119_v41 = vmul.f32 0.01, %v1114_v37 }
 0x4a2   : > { %v1120_v42 = vsel %vm1116_vm12, %v1112_v35, %v1118_v40 }
 0x4a3   : > { %1174 = vst [vmem:[#allocation2 + $0x20] sm:$0xf] %v1120_v42  ;;  %v1121_v43 = vsel %vm1117_vm13, %v1114_v37, %v1119_v41  ;;  %1132 = vrot.lane.b32.xlu0 %v1120_v42, %s1649_s20 }
 0x4a4   : > { %1175 = vst [vmem:[#allocation2 + $0x28] sm:$0xf] %v1121_v43  ;;  %1134 = vrot.lane.b32.xlu1 %v1121_v43, %s1649_s20  ;;  %s1658_s20 = smov [#allocation6]  }
 0x4a7   : > { %1158 = vrot.lane.b32.xlu0 %v1120_v42, %s1648_s12 }
 0x4a8   : > { %1160 = vrot.lane.b32.xlu1 %v1121_v43, %s1648_s12 }
 0x4ab   : > { %1122 = vrot.lane.b32.xlu0 %v1120_v42, %s1650_s24 }
 0x4ac   : > { %1124 = vrot.lane.b32.xlu1 %v1121_v43, %s1650_s24  ;;  %s1583_s24 = sshll.u32 %s1658_s20, 4  ;;  %s1584_s24 = int_to_ptr.vmem [resolvable:$false] %s1583_s24 }
 0x4af   : > { %1148 = vrot.lane.b32.xlu0 %v1120_v42, %s1651_s30 }
 0x4b0   : > { %1150 = vrot.lane.b32.xlu1 %v1121_v43, %s1651_s30  ;;  %s1585_s30 = scalar_lea.vmem %s1584_s24, 512 }
 0x4b3   : > { %1176 = vrot.lane.b32.xlu0 %v1120_v42, %s2330_s27 }
 0x4b4   : > { %1178 = vrot.lane.b32.xlu1 %v1121_v43, %s2330_s27  ;;  %s1456_s27 = sshll.u32 %s1735_s17, 8  ;;  %s1338_s17 = scalar_lea.sflag [#allocation5], %s1819_s28 }
 0x4b5   : > { %s2255_s12 = scalar_lea.hbm %s2311_s10, %s1456_s27 }
 0x4b7   : > { %1202 = vrot.lane.b32.xlu0 %v1120_v42, %s2331_s23 }
 0x4b8   : > { %1204 = vrot.lane.b32.xlu1 %v1121_v43, %s2331_s23  ;;  %s2334_s23 = sshll.u32 %s1819_s28, 4 }
 0x4bb   : > { %1192 = vrot.lane.b32.xlu0 %v1120_v42, %s2332_s29 }
 0x4bc   : > { %1194 = vrot.lane.b32.xlu1 %v1121_v43, %s2332_s29  ;;  %s375_s29 = scalar_lea.vmem [#allocation6], %s2334_s23 }
 0x4bf   : > { %1218 = vrot.lane.b32.xlu0 %v1120_v42, %s2333_s22 }
 0x4c0   : > { %1220 = vrot.lane.b32.xlu1 %v1121_v43, %s2333_s22  ;;  %s1352_s22 = sshll.u32 %s375_s29, 4  ;;  %s2257_s22 = int_to_ptr.vmem [resolvable:$true] %s1352_s22 }
 0x4c1   : > { %p1586_p7 = scmp.lt.s32.totalorder %s2257_s22, %s1584_s24 }
 0x4c3   : > { %1242 = vperm.xlu0 %1545, %v1239_v46  }
 0x515   : > { %v1133_v47 = vpop.permute.xlu0 %1132 }
 0x516   : > { %v1135_v10 = vpop.permute.xlu1 %1134 }
 0x517   : > { %v1136_v11 = vsel %vm427_vm1, %v1133_v47, %v1135_v10  ;;  %v1137_v48 = vsel %vm427_vm1, %v1135_v10, %v1133_v47 }
 0x518   : > { %v1138_v49 = vmul.f32 %v1137_v48, %v1884_v19  ;;  %v1139_v50 = vmul.f32 %v1136_v11, %v1887_v20 }
 0x519   : > { %v1159_v51 = vpop.permute.xlu0 %1158 }
 0x51a   : > { %v1142_v52 = vrot.slane %v1138_v49, 4  ;;  %v1143_v0 = vrot.slane %v1139_v50, 4  ;;  %v1161_v1 = vpop.permute.xlu1 %1160 }
 0x51b   : > { %v1162_v4 = vsel %vm477_vm0, %v1159_v51, %v1161_v1  ;;  %v1163_v57 = vsel %vm477_vm0, %v1161_v1, %v1159_v51 }
 0x51c   : > { %1146 = vst [vmem:[#allocation2] sm:$0xf0] %v1142_v52  ;;  %1147 = vst [vmem:[#allocation2 + $0x8] sm:$0xf0] %v1143_v0  ;;  %v1164_v58 = vmul.f32 %v1163_v57, %v1878_v17  ;;  %v1165_v59 = vmul.f32 %v1162_v4, %v1881_v18 }
 0x51d   : > { %v1123_v60 = vpop.permute.xlu0 %1122 }
 0x51e   : > { %v1168_v19 = vrot.slane %v1164_v58, 4  ;;  %v1169_v61 = vrot.slane %v1165_v59, 4  ;;  %v1125_v20 = vpop.permute.xlu1 %1124 }
 0x51f   : > { %v1126_v2 = vsel %vm405_vm2, %v1123_v60, %v1125_v20  ;;  %v1127_v3 = vsel %vm405_vm2, %v1125_v20, %v1123_v60 }
 0x520   : > { %1172 = vst [vmem:[#allocation2 + $0x10] sm:$0xf0] %v1168_v19  ;;  %1173 = vst [vmem:[#allocation2 + $0x18] sm:$0xf0] %v1169_v61  ;;  %v1128_v5 = vmul.f32 %v1127_v3, %v1891_v23  ;;  %v1129_v6 = vmul.f32 %v1126_v2, %v1894_v24  ;;  %v1547_v61 = vld [vmem:[%s1825_s21] sm:$0xff]  ;;  %v1548_v2 = vld [vmem:[%s1825_s21 + $0x8] sm:$0xff] }
 0x521   : > { %v1149_v7 = vpop.permute.xlu0 %1148  ;;  %s1579_s21 = scalar_lea.vmem %s2257_s22, 256 }
 0x522   : > { %1130 = vst [vmem:[#allocation2] sm:$0xf] %v1128_v5  ;;  %1131 = vst [vmem:[#allocation2 + $0x8] sm:$0xf] %v1129_v6  ;;  %v1151_v17 = vpop.permute.xlu1 %1150  ;;  %p1580_p6 = scmp.ne.s32.totalorder %s2257_s22, %s1579_s21  ;;  %p1587_p10 = scmp.lt.s32.totalorder %s1585_s30, %s1579_s21 }
 0x523   : > { %v1152_v18 = vsel %vm455_vm3, %v1149_v7, %v1151_v17  ;;  %v1153_v8 = vsel %vm455_vm3, %v1151_v17, %v1149_v7 }
 0x524   : > { %v1154_v12 = vmul.f32 %v1153_v8, %v1919_v44  ;;  %v1155_v13 = vmul.f32 %v1152_v18, %v1922_v45  ;;  %p1581_p12 = pnand %p1580_p6, %p2335_p11  ;;  %p1588_p2 = por %p1587_p10, %p1586_p7 }
 0x525   : > { %v1177_v14 = vpop.permute.xlu0 %1176 }
 0x526   : > { %1156 = vst [vmem:[#allocation2 + $0x10] sm:$0xf] %v1154_v12  ;;  %1157 = vst [vmem:[#allocation2 + $0x18] sm:$0xf] %v1155_v13  ;;  %v1179_v23 = vpop.permute.xlu1 %1178  ;;  %p1582_p13 = pneg %p1581_p12 }
 0x527   : > { %v1180_v24 = vsel %vm507_vm4, %v1177_v14, %v1179_v23  ;;  %v1181_v21 = vsel %vm507_vm4, %v1179_v23, %v1177_v14 }
 0x528   : > { %v1182_v22 = vmul.f32 %v1180_v24, %v1935_v53  ;;  %v1183_v25 = vmul.f32 %v1181_v21, %v1938_v54  ;;  %p1589_p4 = pnand %p1588_p2, %p1582_p13 }
 0x529   : > { %v1203_v26 = vpop.permute.xlu0 %1202  ;;  %v1230_v32 = vld [vmem:[#allocation2 + $0x8] sm:$0xff]  ;;  %v1229_v54 = vld [vmem:[#allocation2] sm:$0xff] }
 0x52a   : > { %v1186_v27 = vrot.slane %v1182_v22, 4  ;;  %v1187_v28 = vrot.slane %v1183_v25, 4  ;;  %v1205_v44 = vpop.permute.xlu1 %1204 }
 0x52b   : > { %v1206_v45 = vsel %vm557_vm5, %v1203_v26, %v1205_v44  ;;  %v1207_v29 = vsel %vm557_vm5, %v1205_v44, %v1203_v26 }
 0x52c   : > { %1190 = vst [vmem:[#allocation2 + $0x20] sm:$0xf0] %v1186_v27  ;;  %1191 = vst [vmem:[#allocation2 + $0x28] sm:$0xf0] %v1187_v28  ;;  %v1208_v30 = vmul.f32 %v1206_v45, %v1951_v62  ;;  %v1209_v31 = vmul.f32 %v1207_v29, %v1954_v63 }
 0x52d   : > { %v1193_v53 = vpop.permute.xlu0 %1192  ;;  %v1232_v33 = vld [vmem:[#allocation2 + $0x18] sm:$0xff]  ;;  %v1231_v34 = vld [vmem:[#allocation2 + $0x10] sm:$0xff] }
 0x52e   : > { %v1212_v35 = vrot.slane %v1208_v30, 4  ;;  %v1213_v36 = vrot.slane %v1209_v31, 4  ;;  %v1195_v37 = vpop.permute.xlu1 %1194  ;;  %v1481_v40 = vpack.c.bf16 %v1232_v33, %v1230_v32  ;;  %v1483_v41 = vpack.c.bf16 %v1231_v34, %v1229_v54 }
 0x52f   : > { %v1196_v42 = vsel %vm535_vm6, %v1193_v53, %v1195_v37  ;;  %v1197_v43 = vsel %vm535_vm6, %v1195_v37, %v1193_v53 }
 0x530   : > { %1216 = vst [vmem:[#allocation2 + $0x30] sm:$0xf0] %v1212_v35  ;;  %1217 = vst [vmem:[#allocation2 + $0x38] sm:$0xf0] %v1213_v36  ;;  %v1198_v62 = vmul.f32 %v1196_v42, %v1967_v15  ;;  %v1199_v63 = vmul.f32 %v1197_v43, %v1970_v16  ;;  %1482 = vmatprep.subr.bf16.mxu1 %v1481_v40 }
 0x531   : > { %1484 = vmatpush1.bf16.msra.mxu1 %v1483_v41  ;;  %v1219_v46 = vpop.permute.xlu0 %1218 }
 0x532   : > { %1200 = vst [vmem:[#allocation2 + $0x30] sm:$0xf] %v1198_v62  ;;  %1201 = vst [vmem:[#allocation2 + $0x38] sm:$0xf] %v1199_v63  ;;  %v1221_v47 = vpop.permute.xlu1 %1220 }
 0x533   : > { %v1222_v10 = vsel %vm585_vm7, %v1219_v46, %v1221_v47  ;;  %v1223_v11 = vsel %vm585_vm7, %v1221_v47, %v1219_v46  ;;  %v1234_v15 = vld [vmem:[#allocation2 + $0x28] sm:$0xff]  ;;  %v1233_v50 = vld [vmem:[#allocation2 + $0x20] sm:$0xff] }
 0x534   : > { %v1224_v48 = vmul.f32 %v1222_v10, %v1983_v38  ;;  %v1225_v49 = vmul.f32 %v1223_v11, %v1986_v39 }
 0x536   : > { %1226 = vst [vmem:[#allocation2 + $0x40] sm:$0xf] %v1224_v48  ;;  %1227 = vst [vmem:[#allocation2 + $0x48] sm:$0xf] %v1225_v49 }
 0x539   : > { %v1236_v16 = vld [vmem:[#allocation2 + $0x38] sm:$0xff]  ;;  %v1235_v51 = vld [vmem:[#allocation2 + $0x30] sm:$0xff] }
 0x53a   : > { %v1485_v52 = vpack.c.bf16 %v1236_v16, %v1234_v15  ;;  %v1487_v0 = vpack.c.bf16 %v1235_v51, %v1233_v50 }
 0x53c   : > { %1486 = vmatprep.subr.bf16.mxu1 %v1485_v52 }
 0x53d   : > { %1488 = vmatpush1.bf16.msra.mxu1 %v1487_v0  ;;  %v1238_v1 = vld [vmem:[#allocation2 + $0x48] sm:$0xf]  ;;  %v1237_v38 = vld [vmem:[#allocation2 + $0x40] sm:$0xf] }
 0x53e   : > { %1447 = vmatprep.subr.msk.mxu1 %vm624_vm8, %v1238_v1 }
 0x541   : > { %1448 = vmatpush1.msk.msra.mxu1 %vm624_vm8, %v1237_v38 }
 0x542   : > { %1449 = vmatmul.mubr.msk.f32.vlgmr.msra.gmra.mrb[2].mxu1 %vm620_vm9, %v1228_v9  ;;  %v1243_v39 = vpop.permute.xlu0 %1242 }
 0x615   : > { %v1320_v4 = vpop.f32.mrb[2].mxu1 }
 0x616   : > { %v1321_v57 = vadd.f32 %v1320_v4, %v1243_v39  ;;  %v1322_v58 = vpop.f32.mrb[3].mxu1 }
 0x617   : > { %v1323_v59 = vadd.f32 %v1322_v58, %v1243_v39 }
 0x618   : > { %v1327_v60 = vrot.slane %v1321_v57, 4 }
 0x619   : > { %v1328_v19 = vrot.slane %v1323_v59, 4 }
 0x61a   : > { %v1331_v20 = vadd.f32 %v1547_v61, %v1327_v60 }
 0x61b   : > { %v1332_v3 = vadd.f32 %v1548_v2, %v1328_v19 }
 0x61c   : > { %v1333_v5 = vsel %vm624_vm8, %v2076_v55, %v1331_v20 }
 0x61d   : > { %v1334_v6 = vsel %vm624_vm8, %v2079_v56, %v1332_v3  ;;  %1335 = vst [vmem:[%s375_s29] sm:$0xff] %v1333_v5 }
 0x61e   : > { %1336 = vst [vmem:[%s375_s29 + $0x8] sm:$0xff] %v1334_v6 }
 0x61f   : > { %1592 = shalt.err (!%p1589_p4)
}
 0x620   : > { %s1593_s28 = scalar_lea.hbm %s2255_s12, 256  ;;  %s1597_s29 = scalar_lea.hbm %s2311_s10, 512 }
 0x621   : > { %p1594_p5 = scmp.ne.s32.totalorder %s2255_s12, %s1593_s28  ;;  %p1598_p0 = scmp.lt.u32.totalorder %s2255_s12, %s2311_s10 }
 0x622   : > { %p1599_p1 = scmp.lt.u32.totalorder %s1597_s29, %s1593_s28  ;;  %p1601_p6 = scmp.lt.u32.totalorder %s1593_s28, %s2255_s12 }
 0x623   : > { %p1595_p8 = pnand %p1594_p5, %p2335_p11 }
 0x624   : > { %p1600_p3 = por %p1599_p1, %p1598_p0 }
 0x625   : > { %p1596_p9 = pneg %p1595_p8 }
 0x626   : > { %p1602_p12 = por %p1601_p6, %p1600_p3 }
 0x628   : > { %p1603_p13 = pnand %p1602_p12, %p1596_p9 }
 0x62a   : > { %1606 = shalt.err (!%p1603_p13)
}
 0x62b   : > { %1491 = dma.vmem_to_hbm [thread:$0]  (%p2335_p11), %s2257_s22, 256, %s2255_s12, %s1338_s17  }
 0x62c PF: > { %s1364_s21 = sand.u32 1, %s1633_s13   ;;  %p2336_p7 = scmp.ne.s32.totalorder %s2326_s26, 0 }
 0x62d   : > { %p2337_p10 = scmp.ge.s32.totalorder %s1645_s16, 2  ;;  %s1365_s20 = scalar_lea.sflag [#allocation5], %s1364_s21 }
 0x62f   : > { %p1498_p2 = pnand %p2337_p10, %p2336_p7 }
 0x631   : > { %1628 = dma.done.wait (!%p1498_p2), %s1365_s20, 256  }
 0x632   : > { %1630 = vsyncadd (!%p1498_p2), %s1365_s20, 4294967040  ;;  %s2338_s24 = sld [smem:[#allocation9_spill]]  ;;  %p23_p4 = scmp.ge.s32.totalorder %s1739_s19, 4  }
 0x633   : > { %s2339_s13 = smov %s1637_s14  ;;  %s2340_s14 = smov %s1641_s15 }
 0x634   : > { %s2342_s16 = smov %s1739_s19  ;;  %25 = sbr.rel (!%p23_p4) target bundleno = 5 (0x5), region = 112 }
 0x638   : > { %s2341_s15 = smov %s2338_s24 }
 0x63b   :  { %1370 = vsyncpa [#allocation4], 1 }
 0x63c   :  { %1372 = vsyncpa [#allocation4 + $0x1], 1 }
 0x63d   :  { %1373 = vsyncpa [#allocation5], 1 }
 0x63e   :  { %1375 = vsyncpa [#allocation5 + $0x1], 1 }

</bundles_post_ra>
